<compile_context>
chip_gen: v7x
topology: tpu7x:2x2x1
jax: 0.10.0
libtpu: 0.0.40
codegen_flags: <defaults>
</compile_context>

<pallas_src>
from functools import partial

import jax
import jax.numpy as jnp
from jax import lax
from jax.experimental import pallas as pl
from jax.experimental.pallas import tpu as pltpu

_MXU_DTYPE = jnp.bfloat16  # MXU operand dtype; accumulation is always f32.


def _layer_norm_f32(v, w, b, eps=1e-5):
    # v: (M, C) float32; w, b: (1, C) float32
    mu = jnp.mean(v, axis=-1, keepdims=True)
    var = jnp.mean(jnp.square(v - mu), axis=-1, keepdims=True)
    return (v - mu) * lax.rsqrt(var + eps) * w + b


def block_kernel(x_ref, vec_ref, b1_ref, wqkv_ref, wo_ref, w1_ref, w2_ref,
                 o_ref, *, n_head, head_size):
    bt, T, C = x_ref.shape

    # f32 working copy for LayerNorm statistics / softmax / residuals.
    x_f32 = x_ref[...].reshape(bt * T, C).astype(jnp.float32)

    # Packed (8, C) f32 slab of LN weights / small biases.
    vecs = vec_ref[...]
    ln1_w, ln1_b = vecs[0:1, :], vecs[1:2, :]
    bo = vecs[2:3, :]
    ln2_w, ln2_b = vecs[3:4, :], vecs[4:5, :]
    b2 = vecs[5:6, :]

    # ---- LayerNorm1 + fused q/k/v projection (bf16 operands, f32 acc) ----
    xn = _layer_norm_f32(x_f32, ln1_w, ln1_b).astype(_MXU_DTYPE)
    qkv = jnp.dot(xn, wqkv_ref[...],
                  preferred_element_type=jnp.float32)          # (bt*T, 3C) f32

    # 1/sqrt(head_size) is already folded into the q columns of wqkv.
    q = qkv[:, 0 * C:1 * C].reshape(bt, T, C).astype(_MXU_DTYPE)
    k = qkv[:, 1 * C:2 * C].reshape(bt, T, C).astype(_MXU_DTYPE)
    v = qkv[:, 2 * C:3 * C].reshape(bt, T, C).astype(_MXU_DTYPE)

    # Batch-invariant causal mask, built once.
    rows = lax.broadcasted_iota(jnp.int32, (1, T, T), 1)
    cols = lax.broadcasted_iota(jnp.int32, (1, T, T), 2)
    causal = rows >= cols
    neg_big = jnp.float32(-1e30)  # finite: robust if reused with padding masks

    # ---- attention: per-head loop, matmuls batched over the batch tile.
    # Each head's output is folded straight into the output projection, so
    # there is no attention scratch buffer, no masked sub-lane stores and no
    # concatenate/relayout.
    sa = jnp.zeros((bt * T, C), jnp.float32)
    for h in range(n_head):
        lo = h * head_size
        hi = lo + head_size
        qh = q[:, :, lo:hi]                                    # (bt, T, hs)
        kh = k[:, :, lo:hi]
        vh = v[:, :, lo:hi]
        s = jnp.einsum('bqd,bkd->bqk', qh, kh,
                       preferred_element_type=jnp.float32)     # (bt, T, T)
        s = jnp.where(causal, s, neg_big)
        s = s - jnp.max(s, axis=-1, keepdims=True)
        p = jnp.exp(s)
        p = p / jnp.sum(p, axis=-1, keepdims=True)             # exact softmax
        oh = jnp.einsum('bqk,bkd->bqd', p.astype(_MXU_DTYPE), vh,
                        preferred_element_type=jnp.float32)    # (bt, T, hs)
        sa = sa + jnp.dot(oh.reshape(bt * T, head_size).astype(_MXU_DTYPE),
                          wo_ref[lo:hi, :],
                          preferred_element_type=jnp.float32)
    sa = sa + bo

    x1 = x_f32 + sa                                            # first residual

    # ---- feed-forward on LayerNorm2(x1) ----
    xn2 = _layer_norm_f32(x1, ln2_w, ln2_b).astype(_MXU_DTYPE)
    h1 = jnp.dot(xn2, w1_ref[...],
                 preferred_element_type=jnp.float32) + b1_ref[...]
    h1 = jnp.maximum(h1, 0.0).astype(_MXU_DTYPE)               # ReLU
    ff = jnp.dot(h1, w2_ref[...],
                 preferred_element_type=jnp.float32) + b2

    out = x1 + ff                                              # second residual
    o_ref[...] = out.reshape(bt, T, C).astype(o_ref.dtype)


# ---------------------------- host-side helpers ----------------------------
def _physical_vmem_bytes():
    """Per-core VMEM capacity; conservative v7x (64 MiB) fallback."""
    try:
        return int(pltpu.get_tpu_info().vmem_capacity_bytes)
    except Exception:
        return 64 * 1024 * 1024


def _num_tensorcores():
    """TensorCores per chip (2 on v7x megacore, 1 on v5e/v6e); best effort."""
    try:
        return max(1, int(getattr(jax.devices()[0], "num_cores", 1)))
    except Exception:
        return 1


def _vmem_bytes_needed(b_tile, T, C, io_itemsize, weight_bytes):
    """Rough per-step VMEM footprint (weights single-buffered, x/out double)."""
    rows = b_tile * T
    io = 2 * 2 * io_itemsize * b_tile * T * C          # double-buffered x + out
    act_f32 = 4 * rows * (C + 3 * C + C + 4 * C + C)   # x_f32, qkv, x1, h1, ff
    act_bf16 = 2 * rows * (3 * C + C + 4 * C)          # q/k/v, xn/xn2, relu(h1)
    scores = 2 * 4 * b_tile * T * T                    # s and p for one head
    return weight_bytes + io + act_f32 + act_bf16 + scores


def _pick_b_tile(B, T, fits, n_cores):
    """Largest batch tile with ~<=512 rows/step that fits VMEM; on multi-TC
    chips prefer a grid that splits evenly across the cores."""
    divisors = [d for d in range(1, B + 1) if B % d == 0]
    fitting = [d for d in divisors if fits(d)] or [1]
    small = [d for d in fitting if d * T <= 512]
    b_tile = max(small) if small else min(fitting)
    if n_cores > 1:
        even = [d for d in small if (B // d) % n_cores == 0]
        if even:
            b_tile = max(even)
    return b_tile


def transformer_block(x, params, *, n_head, b_tile=None):
    B, T, C = x.shape
    assert C % n_head == 0
    head_size = C // n_head
    dtype = x.dtype
    itemsize = jnp.dtype(dtype).itemsize

    # ---- host-side packing: fused qkv (scale folded into q), bf16 weights ----
    scale = float(head_size) ** -0.5
    w_qkv = jnp.concatenate(
        [params["wq"] * scale, params["wk"], params["wv"]], axis=1
    ).astype(_MXU_DTYPE)                                  # (C, 3C)
    wo = params["wo"].astype(_MXU_DTYPE)                  # (C, C)
    w1 = params["w1"].astype(_MXU_DTYPE)                  # (C, 4C)
    w2 = params["w2"].astype(_MXU_DTYPE)                  # (4C, C)
    # Seven small vectors -> one (8, C) f32 slab + one (1, 4C) f32 bias.
    vec_slab = jnp.concatenate(
        [params["ln1_w"].reshape(1, C), params["ln1_b"].reshape(1, C),
         params["bo"].reshape(1, C),
         params["ln2_w"].reshape(1, C), params["ln2_b"].reshape(1, C),
         params["b2"].reshape(1, C),
         jnp.zeros((2, C), jnp.float32)], axis=0).astype(jnp.float32)
    b1 = params["b1"].reshape(1, 4 * C).astype(jnp.float32)

    weight_bytes = (2 * (w_qkv.size + wo.size + w1.size + w2.size)
                    + 4 * (vec_slab.size + b1.size))

    # ---- generation-aware tile choice and VMEM budget ----
    phys_vmem = _physical_vmem_bytes()
    budget = int(0.85 * phys_vmem)      # headroom for Mosaic internal scratch

    def fits(bt_):
        return int(1.25 * _vmem_bytes_needed(bt_, T, C, itemsize,
                                             weight_bytes)) <= budget

    if b_tile is None:
        b_tile = _pick_b_tile(B, T, fits, _num_tensorcores())
    assert B % b_tile == 0, "b_tile must divide B"
    grid_b = B // b_tile

    need = _vmem_bytes_needed(b_tile, T, C, itemsize, weight_bytes)
    vmem_limit = int(min(budget, max(32 * 1024 * 1024, int(1.5 * need))))

    # ---- advisory cost estimate ----
    flops = int(2 * B * T * C * 3 * C            # fused qkv projection
                + 2 * B * T * T * C * 2          # scores + p@v (all heads)
                + 2 * B * T * C * C              # output projection
                + 2 * B * T * C * 4 * C * 2)     # FFN
    transcendentals = int(B * n_head * T * T + 2 * B * T)
    bytes_accessed = int(itemsize * 2 * B * T * C + weight_bytes)
    cost = pl.CostEstimate(flops=flops, transcendentals=transcendentals,
                           bytes_accessed=bytes_accessed)

    # Weights / bias slabs: whole array resident in VMEM, outside the grid
    # pipeline -> single copy, no per-step DMA and no double buffer.
    weight_specs = [pl.BlockSpec(memory_space=pltpu.MemorySpace.VMEM)
                    for _ in range(6)]

    kernel = partial(block_kernel, n_head=n_head, head_size=head_size)

    return pl.pallas_call(
        kernel,
        out_shape=jax.ShapeDtypeStruct((B, T, C), dtype),
        grid_spec=pltpu.PrefetchScalarGridSpec(
            num_scalar_prefetch=0,
            grid=(grid_b,),
            in_specs=[pl.BlockSpec((b_tile, T, C), lambda b: (b, 0, 0))]
                     + weight_specs,
            out_specs=pl.BlockSpec((b_tile, T, C), lambda b: (b, 0, 0)),
        ),
        compiler_params=pltpu.CompilerParams(
            dimension_semantics=("parallel",),
            vmem_limit_bytes=vmem_limit,
        ),
        cost_estimate=cost,
    )(x, vec_slab, b1, w_qkv, wo, w1, w2)


# ---------------- pure-JAX reference (for correctness check) ----------------
def reference_block(x, p, *, n_head):
    B, T, C = x.shape
    hs = C // n_head

    def ln(v, w, b):
        mu = jnp.mean(v, axis=-1, keepdims=True)
        var = jnp.mean((v - mu) ** 2, axis=-1, keepdims=True)
        return (v - mu) / jnp.sqrt(var + 1e-5) * w + b

    xn = ln(x, p["ln1_w"], p["ln1_b"])
    q = xn @ p["wq"]
    k = xn @ p["wk"]
    v = xn @ p["wv"]
    mask = jnp.tril(jnp.ones((T, T), dtype=bool))
    outs = []
    for h in range(n_head):
        qh, kh, vh = (a[..., h * hs:(h + 1) * hs] for a in (q, k, v))
        s = jnp.einsum("btd,bsd->bts", qh, kh) * hs ** -0.5
        s = jnp.where(mask, s, -jnp.inf)
        w = jax.nn.softmax(s, axis=-1)
        outs.append(jnp.einsum("bts,bsd->btd", w, vh))
    sa = jnp.concatenate(outs, axis=-1) @ p["wo"] + p["bo"]
    x1 = x + sa
    xn2 = ln(x1, p["ln2_w"], p["ln2_b"])
    ff = jnp.maximum(xn2 @ p["w1"] + p["b1"], 0.0) @ p["w2"] + p["b2"]
    return x1 + ff


if __name__ == "__main__":
    # small but lane-dense shapes: block_size = T = 16, n_embd = C = 128
    B, T, C, n_head = 2, 16, 128, 4

    key = jax.random.PRNGKey(0)
    keys = jax.random.split(key, 16)

    x = jax.random.normal(keys[0], (B, T, C), dtype=jnp.float32)

    def rnd(k, shape, scale=0.1):
        return (scale * jax.random.normal(k, shape)).astype(jnp.float32)

    params = {
        "ln1_w": jnp.ones((1, C), jnp.float32),
        "ln1_b": jnp.zeros((1, C), jnp.float32),
        "wq": rnd(keys[1], (C, C)),
        "wk": rnd(keys[2], (C, C)),
        "wv": rnd(keys[3], (C, C)),
        "wo": rnd(keys[4], (C, C)),
        "bo": rnd(keys[5], (1, C)),
        "ln2_w": jnp.ones((1, C), jnp.float32),
        "ln2_b": jnp.zeros((1, C), jnp.float32),
        "w1": rnd(keys[6], (C, 4 * C)),
        "b1": rnd(keys[7], (1, 4 * C)),
        "w2": rnd(keys[8], (4 * C, C)),
        "b2": rnd(keys[9], (1, C)),
    }

    out = transformer_block(x, params, n_head=n_head)
    out = jax.block_until_ready(out)

    ref = reference_block(x, params, n_head=n_head)
    assert out.shape == (B, T, C)
    # tolerance covers bf16 MXU operands (accumulation is f32 throughout)
    assert jnp.allclose(out, ref, atol=5e-2, rtol=5e-2), "mismatch vs reference"

    print("KERNEL_OK")
</pallas_src>

<mosaic_0001>
module attributes {stable_mosaic.version = 11 : i64} {
  func.func @block_kernel(%arg0: i32, %arg1: memref<2x16x128xf32, #tpu.memory_space<vmem>>, %arg2: memref<8x128xf32, #tpu.memory_space<vmem>>, %arg3: memref<1x512xf32, #tpu.memory_space<vmem>>, %arg4: memref<128x384xbf16, #tpu.memory_space<vmem>>, %arg5: memref<128x128xbf16, #tpu.memory_space<vmem>>, %arg6: memref<128x512xbf16, #tpu.memory_space<vmem>>, %arg7: memref<512x128xbf16, #tpu.memory_space<vmem>>, %arg8: memref<2x16x128xf32, #tpu.memory_space<vmem>>) attributes {dimension_semantics = [#tpu.dimension_semantics<parallel>], iteration_bounds = array<i64: 1>, scalar_prefetch = 0 : i64, scratch_operands = 0 : i64, tpu.core_type = #tpu.core_type<tc>, window_params = [{transform_indices = @transform_0, window_bounds = array<i64: 2, 16, 128>}, {pipeline_mode = #tpu.pipeline_mode<synchronous>, transform_indices = @transform_1, window_bounds = array<i64: 8, 128>}, {pipeline_mode = #tpu.pipeline_mode<synchronous>, transform_indices = @transform_2, window_bounds = array<i64: 1, 512>}, {pipeline_mode = #tpu.pipeline_mode<synchronous>, transform_indices = @transform_3, window_bounds = array<i64: 128, 384>}, {pipeline_mode = #tpu.pipeline_mode<synchronous>, transform_indices = @transform_4, window_bounds = array<i64: 128, 128>}, {pipeline_mode = #tpu.pipeline_mode<synchronous>, transform_indices = @transform_5, window_bounds = array<i64: 128, 512>}, {pipeline_mode = #tpu.pipeline_mode<synchronous>, transform_indices = @transform_6, window_bounds = array<i64: 512, 128>}, {transform_indices = @transform_7, window_bounds = array<i64: 2, 16, 128>}]} {
    %c0 = arith.constant 0 : index
    %c0_0 = arith.constant 0 : index
    %c0_1 = arith.constant 0 : index
    %0 = vector.load %arg1[%c0, %c0_0, %c0_1] : memref<2x16x128xf32, #tpu.memory_space<vmem>>, vector<2x16x128xf32>
    %1 = vector.shape_cast %0 : vector<2x16x128xf32> to vector<32x128xf32>
    %c0_2 = arith.constant 0 : index
    %c0_3 = arith.constant 0 : index
    %2 = vector.load %arg2[%c0_2, %c0_3] : memref<8x128xf32, #tpu.memory_space<vmem>>, vector<8x128xf32>
    %3 = vector.extract_strided_slice %2 {offsets = [0, 0], sizes = [1, 128], strides = [1, 1]} : vector<8x128xf32> to vector<1x128xf32>
    %4 = vector.extract_strided_slice %2 {offsets = [1, 0], sizes = [1, 128], strides = [1, 1]} : vector<8x128xf32> to vector<1x128xf32>
    %5 = vector.extract_strided_slice %2 {offsets = [2, 0], sizes = [1, 128], strides = [1, 1]} : vector<8x128xf32> to vector<1x128xf32>
    %6 = vector.extract_strided_slice %2 {offsets = [3, 0], sizes = [1, 128], strides = [1, 1]} : vector<8x128xf32> to vector<1x128xf32>
    %7 = vector.extract_strided_slice %2 {offsets = [4, 0], sizes = [1, 128], strides = [1, 1]} : vector<8x128xf32> to vector<1x128xf32>
    %8 = vector.extract_strided_slice %2 {offsets = [5, 0], sizes = [1, 128], strides = [1, 1]} : vector<8x128xf32> to vector<1x128xf32>
    %cst = arith.constant dense<0.000000e+00> : vector<32xf32>
    %9 = vector.multi_reduction <add>, %1, %cst [1] : vector<32x128xf32> to vector<32xf32>
    %10 = vector.shape_cast %9 : vector<32xf32> to vector<32x1xf32>
    %cst_4 = arith.constant 1.280000e+02 : f32
    %11 = vector.broadcast %cst_4 : f32 to vector<32x1xf32>
    %12 = arith.divf %10, %11 : vector<32x1xf32>
    %13 = vector.broadcast %12 : vector<32x1xf32> to vector<32x128xf32>
    %14 = arith.subf %1, %13 : vector<32x128xf32>
    %15 = arith.mulf %14, %14 : vector<32x128xf32>
    %cst_5 = arith.constant dense<0.000000e+00> : vector<32xf32>
    %16 = vector.multi_reduction <add>, %15, %cst_5 [1] : vector<32x128xf32> to vector<32xf32>
    %17 = vector.shape_cast %16 : vector<32xf32> to vector<32x1xf32>
    %cst_6 = arith.constant 1.280000e+02 : f32
    %18 = vector.broadcast %cst_6 : f32 to vector<32x1xf32>
    %19 = arith.divf %17, %18 : vector<32x1xf32>
    %20 = vector.broadcast %12 : vector<32x1xf32> to vector<32x128xf32>
    %21 = arith.subf %1, %20 : vector<32x128xf32>
    %cst_7 = arith.constant 9.99999974E-6 : f32
    %22 = vector.broadcast %cst_7 : f32 to vector<32x1xf32>
    %23 = arith.addf %19, %22 : vector<32x1xf32>
    %24 = math.rsqrt %23 : vector<32x1xf32>
    %25 = vector.broadcast %24 : vector<32x1xf32> to vector<32x128xf32>
    %26 = arith.mulf %21, %25 : vector<32x128xf32>
    %27 = vector.broadcast %3 : vector<1x128xf32> to vector<32x128xf32>
    %28 = arith.mulf %26, %27 : vector<32x128xf32>
    %29 = vector.broadcast %4 : vector<1x128xf32> to vector<32x128xf32>
    %30 = arith.addf %28, %29 : vector<32x128xf32>
    %31 = arith.truncf %30 : vector<32x128xf32> to vector<32x128xbf16>
    %c0_8 = arith.constant 0 : index
    %c0_9 = arith.constant 0 : index
    %32 = vector.load %arg4[%c0_8, %c0_9] : memref<128x384xbf16, #tpu.memory_space<vmem>>, vector<128x384xbf16>
    %cst_10 = arith.constant dense<0.000000e+00> : vector<32x384xf32>
    %33 = tpu.matmul %31, %32, %cst_10 {dimension_numbers = #tpu.dot_dimension_numbers<[1], [0], [0], [1], [0, 0, 1, 1], [], []>} : vector<32x128xbf16>, vector<128x384xbf16>, vector<32x384xf32> -> vector<32x384xf32>
    %34 = vector.extract_strided_slice %33 {offsets = [0, 0], sizes = [32, 128], strides = [1, 1]} : vector<32x384xf32> to vector<32x128xf32>
    %35 = vector.shape_cast %34 : vector<32x128xf32> to vector<2x16x128xf32>
    %36 = arith.truncf %35 : vector<2x16x128xf32> to vector<2x16x128xbf16>
    %37 = vector.extract_strided_slice %33 {offsets = [0, 128], sizes = [32, 128], strides = [1, 1]} : vector<32x384xf32> to vector<32x128xf32>
    %38 = vector.shape_cast %37 : vector<32x128xf32> to vector<2x16x128xf32>
    %39 = arith.truncf %38 : vector<2x16x128xf32> to vector<2x16x128xbf16>
    %40 = vector.extract_strided_slice %33 {offsets = [0, 256], sizes = [32, 128], strides = [1, 1]} : vector<32x384xf32> to vector<32x128xf32>
    %41 = vector.shape_cast %40 : vector<32x128xf32> to vector<2x16x128xf32>
    %42 = arith.truncf %41 : vector<2x16x128xf32> to vector<2x16x128xbf16>
    %43 = tpu.iota {dimensions = array<i32: 1>} : vector<1x16x16xi32>
    %44 = tpu.iota {dimensions = array<i32: 2>} : vector<1x16x16xi32>
    %45 = arith.cmpi sge, %43, %44 : vector<1x16x16xi32>
    %cst_11 = arith.constant 0.000000e+00 : f32
    %46 = vector.broadcast %cst_11 : f32 to vector<32x128xf32>
    %47 = vector.extract_strided_slice %36 {offsets = [0, 0, 0], sizes = [2, 16, 32], strides = [1, 1, 1]} : vector<2x16x128xbf16> to vector<2x16x32xbf16>
    %48 = vector.extract_strided_slice %39 {offsets = [0, 0, 0], sizes = [2, 16, 32], strides = [1, 1, 1]} : vector<2x16x128xbf16> to vector<2x16x32xbf16>
    %49 = vector.extract_strided_slice %42 {offsets = [0, 0, 0], sizes = [2, 16, 32], strides = [1, 1, 1]} : vector<2x16x128xbf16> to vector<2x16x32xbf16>
    "tpu.trace_start"() <{level = 10 : i32, message = "bqd,bkd->bqk"}> : () -> ()
    %cst_12 = arith.constant dense<0.000000e+00> : vector<2x16x16xf32>
    %50 = tpu.matmul %47, %48, %cst_12 {dimension_numbers = #tpu.dot_dimension_numbers<[2], [2], [1], [1], [0, 0, 0, 1, 1, 1], [0], [0]>} : vector<2x16x32xbf16>, vector<2x16x32xbf16>, vector<2x16x16xf32> -> vector<2x16x16xf32>
    %cst_13 = arith.constant -1.000000e+30 : f32
    "tpu.trace_stop"() : () -> ()
    %51 = vector.shape_cast %45 : vector<1x16x16xi1> to vector<1x16x16xi1>
    %52 = vector.broadcast %51 : vector<1x16x16xi1> to vector<2x16x16xi1>
    %53 = vector.broadcast %cst_13 : f32 to vector<2x16x16xf32>
    %54 = arith.select %52, %50, %53 : vector<2x16x16xi1>, vector<2x16x16xf32>
    %cst_14 = arith.constant dense<0xFF800000> : vector<2x16xf32>
    %55 = vector.multi_reduction <maximumf>, %54, %cst_14 [2] : vector<2x16x16xf32> to vector<2x16xf32>
    %56 = vector.shape_cast %55 : vector<2x16xf32> to vector<2x16x1xf32>
    %57 = vector.broadcast %56 : vector<2x16x1xf32> to vector<2x16x16xf32>
    %58 = arith.subf %54, %57 : vector<2x16x16xf32>
    %59 = math.exp %58 : vector<2x16x16xf32>
    %cst_15 = arith.constant dense<0.000000e+00> : vector<2x16xf32>
    %60 = vector.multi_reduction <add>, %59, %cst_15 [2] : vector<2x16x16xf32> to vector<2x16xf32>
    %61 = vector.shape_cast %60 : vector<2x16xf32> to vector<2x16x1xf32>
    %62 = vector.broadcast %61 : vector<2x16x1xf32> to vector<2x16x16xf32>
    %63 = arith.divf %59, %62 : vector<2x16x16xf32>
    %64 = arith.truncf %63 : vector<2x16x16xf32> to vector<2x16x16xbf16>
    "tpu.trace_start"() <{level = 10 : i32, message = "bqk,bkd->bqd"}> : () -> ()
    %cst_16 = arith.constant dense<0.000000e+00> : vector<2x16x32xf32>
    %65 = tpu.matmul %64, %49, %cst_16 {dimension_numbers = #tpu.dot_dimension_numbers<[2], [1], [1], [2], [0, 0, 0, 1, 1, 2], [0], [0]>} : vector<2x16x16xbf16>, vector<2x16x32xbf16>, vector<2x16x32xf32> -> vector<2x16x32xf32>
    "tpu.trace_stop"() : () -> ()
    %66 = vector.shape_cast %65 : vector<2x16x32xf32> to vector<32x32xf32>
    %67 = arith.truncf %66 : vector<32x32xf32> to vector<32x32xbf16>
    %c0_17 = arith.constant 0 : index
    %c0_18 = arith.constant 0 : index
    %68 = vector.load %arg5[%c0_17, %c0_18] : memref<128x128xbf16, #tpu.memory_space<vmem>>, vector<32x128xbf16>
    %cst_19 = arith.constant dense<0.000000e+00> : vector<32x128xf32>
    %69 = tpu.matmul %67, %68, %cst_19 {dimension_numbers = #tpu.dot_dimension_numbers<[1], [0], [0], [1], [0, 0, 1, 1], [], []>} : vector<32x32xbf16>, vector<32x128xbf16>, vector<32x128xf32> -> vector<32x128xf32>
    %70 = arith.addf %46, %69 : vector<32x128xf32>
    %71 = vector.extract_strided_slice %36 {offsets = [0, 0, 32], sizes = [2, 16, 32], strides = [1, 1, 1]} : vector<2x16x128xbf16> to vector<2x16x32xbf16>
    %72 = vector.extract_strided_slice %39 {offsets = [0, 0, 32], sizes = [2, 16, 32], strides = [1, 1, 1]} : vector<2x16x128xbf16> to vector<2x16x32xbf16>
    %73 = vector.extract_strided_slice %42 {offsets = [0, 0, 32], sizes = [2, 16, 32], strides = [1, 1, 1]} : vector<2x16x128xbf16> to vector<2x16x32xbf16>
    "tpu.trace_start"() <{level = 10 : i32, message = "bqd,bkd->bqk"}> : () -> ()
    %cst_20 = arith.constant dense<0.000000e+00> : vector<2x16x16xf32>
    %74 = tpu.matmul %71, %72, %cst_20 {dimension_numbers = #tpu.dot_dimension_numbers<[2], [2], [1], [1], [0, 0, 0, 1, 1, 1], [0], [0]>} : vector<2x16x32xbf16>, vector<2x16x32xbf16>, vector<2x16x16xf32> -> vector<2x16x16xf32>
    %cst_21 = arith.constant -1.000000e+30 : f32
    "tpu.trace_stop"() : () -> ()
    %75 = vector.shape_cast %45 : vector<1x16x16xi1> to vector<1x16x16xi1>
    %76 = vector.broadcast %75 : vector<1x16x16xi1> to vector<2x16x16xi1>
    %77 = vector.broadcast %cst_21 : f32 to vector<2x16x16xf32>
    %78 = arith.select %76, %74, %77 : vector<2x16x16xi1>, vector<2x16x16xf32>
    %cst_22 = arith.constant dense<0xFF800000> : vector<2x16xf32>
    %79 = vector.multi_reduction <maximumf>, %78, %cst_22 [2] : vector<2x16x16xf32> to vector<2x16xf32>
    %80 = vector.shape_cast %79 : vector<2x16xf32> to vector<2x16x1xf32>
    %81 = vector.broadcast %80 : vector<2x16x1xf32> to vector<2x16x16xf32>
    %82 = arith.subf %78, %81 : vector<2x16x16xf32>
    %83 = math.exp %82 : vector<2x16x16xf32>
    %cst_23 = arith.constant dense<0.000000e+00> : vector<2x16xf32>
    %84 = vector.multi_reduction <add>, %83, %cst_23 [2] : vector<2x16x16xf32> to vector<2x16xf32>
    %85 = vector.shape_cast %84 : vector<2x16xf32> to vector<2x16x1xf32>
    %86 = vector.broadcast %85 : vector<2x16x1xf32> to vector<2x16x16xf32>
    %87 = arith.divf %83, %86 : vector<2x16x16xf32>
    %88 = arith.truncf %87 : vector<2x16x16xf32> to vector<2x16x16xbf16>
    "tpu.trace_start"() <{level = 10 : i32, message = "bqk,bkd->bqd"}> : () -> ()
    %cst_24 = arith.constant dense<0.000000e+00> : vector<2x16x32xf32>
    %89 = tpu.matmul %88, %73, %cst_24 {dimension_numbers = #tpu.dot_dimension_numbers<[2], [1], [1], [2], [0, 0, 0, 1, 1, 2], [0], [0]>} : vector<2x16x16xbf16>, vector<2x16x32xbf16>, vector<2x16x32xf32> -> vector<2x16x32xf32>
    "tpu.trace_stop"() : () -> ()
    %90 = vector.shape_cast %89 : vector<2x16x32xf32> to vector<32x32xf32>
    %91 = arith.truncf %90 : vector<32x32xf32> to vector<32x32xbf16>
    %c32 = arith.constant 32 : index
    %c0_25 = arith.constant 0 : index
    %92 = vector.load %arg5[%c32, %c0_25] : memref<128x128xbf16, #tpu.memory_space<vmem>>, vector<32x128xbf16>
    %cst_26 = arith.constant dense<0.000000e+00> : vector<32x128xf32>
    %93 = tpu.matmul %91, %92, %cst_26 {dimension_numbers = #tpu.dot_dimension_numbers<[1], [0], [0], [1], [0, 0, 1, 1], [], []>} : vector<32x32xbf16>, vector<32x128xbf16>, vector<32x128xf32> -> vector<32x128xf32>
    %94 = arith.addf %70, %93 : vector<32x128xf32>
    %95 = vector.extract_strided_slice %36 {offsets = [0, 0, 64], sizes = [2, 16, 32], strides = [1, 1, 1]} : vector<2x16x128xbf16> to vector<2x16x32xbf16>
    %96 = vector.extract_strided_slice %39 {offsets = [0, 0, 64], sizes = [2, 16, 32], strides = [1, 1, 1]} : vector<2x16x128xbf16> to vector<2x16x32xbf16>
    %97 = vector.extract_strided_slice %42 {offsets = [0, 0, 64], sizes = [2, 16, 32], strides = [1, 1, 1]} : vector<2x16x128xbf16> to vector<2x16x32xbf16>
    "tpu.trace_start"() <{level = 10 : i32, message = "bqd,bkd->bqk"}> : () -> ()
    %cst_27 = arith.constant dense<0.000000e+00> : vector<2x16x16xf32>
    %98 = tpu.matmul %95, %96, %cst_27 {dimension_numbers = #tpu.dot_dimension_numbers<[2], [2], [1], [1], [0, 0, 0, 1, 1, 1], [0], [0]>} : vector<2x16x32xbf16>, vector<2x16x32xbf16>, vector<2x16x16xf32> -> vector<2x16x16xf32>
    %cst_28 = arith.constant -1.000000e+30 : f32
    "tpu.trace_stop"() : () -> ()
    %99 = vector.shape_cast %45 : vector<1x16x16xi1> to vector<1x16x16xi1>
    %100 = vector.broadcast %99 : vector<1x16x16xi1> to vector<2x16x16xi1>
    %101 = vector.broadcast %cst_28 : f32 to vector<2x16x16xf32>
    %102 = arith.select %100, %98, %101 : vector<2x16x16xi1>, vector<2x16x16xf32>
    %cst_29 = arith.constant dense<0xFF800000> : vector<2x16xf32>
    %103 = vector.multi_reduction <maximumf>, %102, %cst_29 [2] : vector<2x16x16xf32> to vector<2x16xf32>
    %104 = vector.shape_cast %103 : vector<2x16xf32> to vector<2x16x1xf32>
    %105 = vector.broadcast %104 : vector<2x16x1xf32> to vector<2x16x16xf32>
    %106 = arith.subf %102, %105 : vector<2x16x16xf32>
    %107 = math.exp %106 : vector<2x16x16xf32>
    %cst_30 = arith.constant dense<0.000000e+00> : vector<2x16xf32>
    %108 = vector.multi_reduction <add>, %107, %cst_30 [2] : vector<2x16x16xf32> to vector<2x16xf32>
    %109 = vector.shape_cast %108 : vector<2x16xf32> to vector<2x16x1xf32>
    %110 = vector.broadcast %109 : vector<2x16x1xf32> to vector<2x16x16xf32>
    %111 = arith.divf %107, %110 : vector<2x16x16xf32>
    %112 = arith.truncf %111 : vector<2x16x16xf32> to vector<2x16x16xbf16>
    "tpu.trace_start"() <{level = 10 : i32, message = "bqk,bkd->bqd"}> : () -> ()
    %cst_31 = arith.constant dense<0.000000e+00> : vector<2x16x32xf32>
    %113 = tpu.matmul %112, %97, %cst_31 {dimension_numbers = #tpu.dot_dimension_numbers<[2], [1], [1], [2], [0, 0, 0, 1, 1, 2], [0], [0]>} : vector<2x16x16xbf16>, vector<2x16x32xbf16>, vector<2x16x32xf32> -> vector<2x16x32xf32>
    "tpu.trace_stop"() : () -> ()
    %114 = vector.shape_cast %113 : vector<2x16x32xf32> to vector<32x32xf32>
    %115 = arith.truncf %114 : vector<32x32xf32> to vector<32x32xbf16>
    %c64 = arith.constant 64 : index
    %c0_32 = arith.constant 0 : index
    %116 = vector.load %arg5[%c64, %c0_32] : memref<128x128xbf16, #tpu.memory_space<vmem>>, vector<32x128xbf16>
    %cst_33 = arith.constant dense<0.000000e+00> : vector<32x128xf32>
    %117 = tpu.matmul %115, %116, %cst_33 {dimension_numbers = #tpu.dot_dimension_numbers<[1], [0], [0], [1], [0, 0, 1, 1], [], []>} : vector<32x32xbf16>, vector<32x128xbf16>, vector<32x128xf32> -> vector<32x128xf32>
    %118 = arith.addf %94, %117 : vector<32x128xf32>
    %119 = vector.extract_strided_slice %36 {offsets = [0, 0, 96], sizes = [2, 16, 32], strides = [1, 1, 1]} : vector<2x16x128xbf16> to vector<2x16x32xbf16>
    %120 = vector.extract_strided_slice %39 {offsets = [0, 0, 96], sizes = [2, 16, 32], strides = [1, 1, 1]} : vector<2x16x128xbf16> to vector<2x16x32xbf16>
    %121 = vector.extract_strided_slice %42 {offsets = [0, 0, 96], sizes = [2, 16, 32], strides = [1, 1, 1]} : vector<2x16x128xbf16> to vector<2x16x32xbf16>
    "tpu.trace_start"() <{level = 10 : i32, message = "bqd,bkd->bqk"}> : () -> ()
    %cst_34 = arith.constant dense<0.000000e+00> : vector<2x16x16xf32>
    %122 = tpu.matmul %119, %120, %cst_34 {dimension_numbers = #tpu.dot_dimension_numbers<[2], [2], [1], [1], [0, 0, 0, 1, 1, 1], [0], [0]>} : vector<2x16x32xbf16>, vector<2x16x32xbf16>, vector<2x16x16xf32> -> vector<2x16x16xf32>
    %cst_35 = arith.constant -1.000000e+30 : f32
    "tpu.trace_stop"() : () -> ()
    %123 = vector.shape_cast %45 : vector<1x16x16xi1> to vector<1x16x16xi1>
    %124 = vector.broadcast %123 : vector<1x16x16xi1> to vector<2x16x16xi1>
    %125 = vector.broadcast %cst_35 : f32 to vector<2x16x16xf32>
    %126 = arith.select %124, %122, %125 : vector<2x16x16xi1>, vector<2x16x16xf32>
    %cst_36 = arith.constant dense<0xFF800000> : vector<2x16xf32>
    %127 = vector.multi_reduction <maximumf>, %126, %cst_36 [2] : vector<2x16x16xf32> to vector<2x16xf32>
    %128 = vector.shape_cast %127 : vector<2x16xf32> to vector<2x16x1xf32>
    %129 = vector.broadcast %128 : vector<2x16x1xf32> to vector<2x16x16xf32>
    %130 = arith.subf %126, %129 : vector<2x16x16xf32>
    %131 = math.exp %130 : vector<2x16x16xf32>
    %cst_37 = arith.constant dense<0.000000e+00> : vector<2x16xf32>
    %132 = vector.multi_reduction <add>, %131, %cst_37 [2] : vector<2x16x16xf32> to vector<2x16xf32>
    %133 = vector.shape_cast %132 : vector<2x16xf32> to vector<2x16x1xf32>
    %134 = vector.broadcast %133 : vector<2x16x1xf32> to vector<2x16x16xf32>
    %135 = arith.divf %131, %134 : vector<2x16x16xf32>
    %136 = arith.truncf %135 : vector<2x16x16xf32> to vector<2x16x16xbf16>
    "tpu.trace_start"() <{level = 10 : i32, message = "bqk,bkd->bqd"}> : () -> ()
    %cst_38 = arith.constant dense<0.000000e+00> : vector<2x16x32xf32>
    %137 = tpu.matmul %136, %121, %cst_38 {dimension_numbers = #tpu.dot_dimension_numbers<[2], [1], [1], [2], [0, 0, 0, 1, 1, 2], [0], [0]>} : vector<2x16x16xbf16>, vector<2x16x32xbf16>, vector<2x16x32xf32> -> vector<2x16x32xf32>
    "tpu.trace_stop"() : () -> ()
    %138 = vector.shape_cast %137 : vector<2x16x32xf32> to vector<32x32xf32>
    %139 = arith.truncf %138 : vector<32x32xf32> to vector<32x32xbf16>
    %c96 = arith.constant 96 : index
    %c0_39 = arith.constant 0 : index
    %140 = vector.load %arg5[%c96, %c0_39] : memref<128x128xbf16, #tpu.memory_space<vmem>>, vector<32x128xbf16>
    %cst_40 = arith.constant dense<0.000000e+00> : vector<32x128xf32>
    %141 = tpu.matmul %139, %140, %cst_40 {dimension_numbers = #tpu.dot_dimension_numbers<[1], [0], [0], [1], [0, 0, 1, 1], [], []>} : vector<32x32xbf16>, vector<32x128xbf16>, vector<32x128xf32> -> vector<32x128xf32>
    %142 = arith.addf %118, %141 : vector<32x128xf32>
    %143 = vector.broadcast %5 : vector<1x128xf32> to vector<32x128xf32>
    %144 = arith.addf %142, %143 : vector<32x128xf32>
    %145 = arith.addf %1, %144 : vector<32x128xf32>
    %cst_41 = arith.constant dense<0.000000e+00> : vector<32xf32>
    %146 = vector.multi_reduction <add>, %145, %cst_41 [1] : vector<32x128xf32> to vector<32xf32>
    %147 = vector.shape_cast %146 : vector<32xf32> to vector<32x1xf32>
    %cst_42 = arith.constant 1.280000e+02 : f32
    %148 = vector.broadcast %cst_42 : f32 to vector<32x1xf32>
    %149 = arith.divf %147, %148 : vector<32x1xf32>
    %150 = vector.broadcast %149 : vector<32x1xf32> to vector<32x128xf32>
    %151 = arith.subf %145, %150 : vector<32x128xf32>
    %152 = arith.mulf %151, %151 : vector<32x128xf32>
    %cst_43 = arith.constant dense<0.000000e+00> : vector<32xf32>
    %153 = vector.multi_reduction <add>, %152, %cst_43 [1] : vector<32x128xf32> to vector<32xf32>
    %154 = vector.shape_cast %153 : vector<32xf32> to vector<32x1xf32>
    %cst_44 = arith.constant 1.280000e+02 : f32
    %155 = vector.broadcast %cst_44 : f32 to vector<32x1xf32>
    %156 = arith.divf %154, %155 : vector<32x1xf32>
    %157 = vector.broadcast %149 : vector<32x1xf32> to vector<32x128xf32>
    %158 = arith.subf %145, %157 : vector<32x128xf32>
    %cst_45 = arith.constant 9.99999974E-6 : f32
    %159 = vector.broadcast %cst_45 : f32 to vector<32x1xf32>
    %160 = arith.addf %156, %159 : vector<32x1xf32>
    %161 = math.rsqrt %160 : vector<32x1xf32>
    %162 = vector.broadcast %161 : vector<32x1xf32> to vector<32x128xf32>
    %163 = arith.mulf %158, %162 : vector<32x128xf32>
    %164 = vector.broadcast %6 : vector<1x128xf32> to vector<32x128xf32>
    %165 = arith.mulf %163, %164 : vector<32x128xf32>
    %166 = vector.broadcast %7 : vector<1x128xf32> to vector<32x128xf32>
    %167 = arith.addf %165, %166 : vector<32x128xf32>
    %168 = arith.truncf %167 : vector<32x128xf32> to vector<32x128xbf16>
    %c0_46 = arith.constant 0 : index
    %c0_47 = arith.constant 0 : index
    %169 = vector.load %arg6[%c0_46, %c0_47] : memref<128x512xbf16, #tpu.memory_space<vmem>>, vector<128x512xbf16>
    %cst_48 = arith.constant dense<0.000000e+00> : vector<32x512xf32>
    %170 = tpu.matmul %168, %169, %cst_48 {dimension_numbers = #tpu.dot_dimension_numbers<[1], [0], [0], [1], [0, 0, 1, 1], [], []>} : vector<32x128xbf16>, vector<128x512xbf16>, vector<32x512xf32> -> vector<32x512xf32>
    %c0_49 = arith.constant 0 : index
    %c0_50 = arith.constant 0 : index
    %171 = vector.load %arg3[%c0_49, %c0_50] : memref<1x512xf32, #tpu.memory_space<vmem>>, vector<1x512xf32>
    %172 = vector.broadcast %171 : vector<1x512xf32> to vector<32x512xf32>
    %173 = arith.addf %170, %172 : vector<32x512xf32>
    %cst_51 = arith.constant 0.000000e+00 : f32
    %174 = vector.broadcast %cst_51 : f32 to vector<32x512xf32>
    %175 = arith.maximumf %173, %174 : vector<32x512xf32>
    %176 = arith.truncf %175 : vector<32x512xf32> to vector<32x512xbf16>
    %c0_52 = arith.constant 0 : index
    %c0_53 = arith.constant 0 : index
    %177 = vector.load %arg7[%c0_52, %c0_53] : memref<512x128xbf16, #tpu.memory_space<vmem>>, vector<512x128xbf16>
    %cst_54 = arith.constant dense<0.000000e+00> : vector<32x128xf32>
    %178 = tpu.matmul %176, %177, %cst_54 {dimension_numbers = #tpu.dot_dimension_numbers<[1], [0], [0], [1], [0, 0, 1, 1], [], []>} : vector<32x512xbf16>, vector<512x128xbf16>, vector<32x128xf32> -> vector<32x128xf32>
    %179 = vector.broadcast %8 : vector<1x128xf32> to vector<32x128xf32>
    %180 = arith.addf %178, %179 : vector<32x128xf32>
    %181 = arith.addf %145, %180 : vector<32x128xf32>
    %182 = vector.shape_cast %181 : vector<32x128xf32> to vector<2x16x128xf32>
    %c0_55 = arith.constant 0 : index
    %c0_56 = arith.constant 0 : index
    %c0_57 = arith.constant 0 : index
    %183 = vector.load %arg8[%c0_55, %c0_56, %c0_57] : memref<2x16x128xf32, #tpu.memory_space<vmem>>, vector<2x16x128xf32>
    tpu.vector_store %arg8[%c0_55, %c0_56, %c0_57], %182 {strides = array<i32>} : memref<2x16x128xf32, #tpu.memory_space<vmem>>, vector<2x16x128xf32>,
    return
  }
  func.func @transform_0(%arg0: i32) -> (i32, i32, i32) {
    %c0_i32 = arith.constant 0 : i32
    %c0_i32_0 = arith.constant 0 : i32
    %c0_i32_1 = arith.constant 0 : i32
    return %arg0, %c0_i32, %c0_i32_0 : i32, i32, i32
  }
  func.func @transform_1(%arg0: i32) -> (i32, i32) {
    %c0_i32 = arith.constant 0 : i32
    %c0_i32_0 = arith.constant 0 : i32
    %c0_i32_1 = arith.constant 0 : i32
    return %c0_i32, %c0_i32_0 : i32, i32
  }
  func.func @transform_2(%arg0: i32) -> (i32, i32) {
    %c0_i32 = arith.constant 0 : i32
    %c0_i32_0 = arith.constant 0 : i32
    %c0_i32_1 = arith.constant 0 : i32
    return %c0_i32, %c0_i32_0 : i32, i32
  }
  func.func @transform_3(%arg0: i32) -> (i32, i32) {
    %c0_i32 = arith.constant 0 : i32
    %c0_i32_0 = arith.constant 0 : i32
    %c0_i32_1 = arith.constant 0 : i32
    return %c0_i32, %c0_i32_0 : i32, i32
  }
  func.func @transform_4(%arg0: i32) -> (i32, i32) {
    %c0_i32 = arith.constant 0 : i32
    %c0_i32_0 = arith.constant 0 : i32
    %c0_i32_1 = arith.constant 0 : i32
    return %c0_i32, %c0_i32_0 : i32, i32
  }
  func.func @transform_5(%arg0: i32) -> (i32, i32) {
    %c0_i32 = arith.constant 0 : i32
    %c0_i32_0 = arith.constant 0 : i32
    %c0_i32_1 = arith.constant 0 : i32
    return %c0_i32, %c0_i32_0 : i32, i32
  }
  func.func @transform_6(%arg0: i32) -> (i32, i32) {
    %c0_i32 = arith.constant 0 : i32
    %c0_i32_0 = arith.constant 0 : i32
    %c0_i32_1 = arith.constant 0 : i32
    return %c0_i32, %c0_i32_0 : i32, i32
  }
  func.func @transform_7(%arg0: i32) -> (i32, i32, i32) {
    %c0_i32 = arith.constant 0 : i32
    %c0_i32_0 = arith.constant 0 : i32
    %c0_i32_1 = arith.constant 0 : i32
    return %arg0, %c0_i32, %c0_i32_0 : i32, i32, i32
  }
}

</mosaic_0001>

<bundles_post_ra>
// kernel: tpu_custom_call.1
= control target key start
LH: loop header
LB: loop body
LE: loop exit
PB: predicated region body
PF: predicated region fallthrough
CT: control target
= control target key end

     0   :  { %12 = vsyncpa [#allocation3], 0  ;;  %s3823_s0 = inlined_call_operand.hbm [shape: f32[2,16,128], index: 0, kind: input, shape index: {}]   ;;  %s3824_s1 = inlined_call_operand.hbm [shape: f32[8,128], index: 1, kind: input, shape index: {}]   ;;  %s3825_s2 = inlined_call_operand.vmem [shape: f32[1,512], index: 2, kind: input, shape index: {}]   ;;  %s3826_s3 = inlined_call_operand.hbm [shape: bf16[128,384], index: 3, kind: input, shape index: {}]   ;;  %s3827_s4 = inlined_call_operand.hbm [shape: bf16[128,128], index: 4, kind: input, shape index: {}]   ;;  %s3828_s5 = inlined_call_operand.hbm [shape: bf16[128,512], index: 5, kind: input, shape index: {}]   ;;  %s3829_s6 = inlined_call_operand.hbm [shape: bf16[512,128], index: 6, kind: input, shape index: {}]   ;;  %s3830_s7 = inlined_call_operand.hbm [shape: f32[2,16,128], index: 7, kind: output, shape index: {}]  }
   0x1   :  { %13 = vsyncpa [#allocation6], 0 }
   0x2   :  { %14 = vsyncpa [#allocation9], 0 }
   0x3   :  { %15 = vsyncpa [#allocation12], 0 }
   0x4   :  { %16 = vsyncpa [#allocation4], 0  ;;  %s3320_s24 = smov [#allocation5]   ;;  %s3321_s26 = smov [#allocation8]  }
   0x5   :  { %s35_s25 = sshll.u32 %s3320_s24, 4  ;;  %s58_s27 = sshll.u32 %s3321_s26, 4  ;;  %s36_s25 = int_to_ptr.vmem [resolvable:$true] %s35_s25  ;;  %s3380_s27 = int_to_ptr.vmem [resolvable:$true] %s58_s27 }
   0x6   :  { %s3156_s30 = scalar_lea.hbm %s3824_s1, 128 }
   0x7   :  { %p3157_p0 = scmp.ne.s32.totalorder %s3824_s1, %s3156_s30  ;;  %p3160_p1 = scmp.lt.u32.totalorder %s3156_s30, %s3824_s1 }
   0x9   :  { %p3162_p2 = pnand %p3160_p1, %p3157_p0 }
   0xb   :  { %3165 = shalt.err (!%p3162_p2)
}
   0xc   :  { %s3166_s12 = scalar_lea.vmem %s36_s25, 128  ;;  %p3171_p4 = scmp.lt.s32.totalorder %s36_s25, %s36_s25 }
   0xd   :  { %p3167_p3 = scmp.ne.s32.totalorder %s36_s25, %s3166_s12  ;;  %p3172_p5 = scmp.lt.s32.totalorder %s3166_s12, %s3166_s12 }
   0xf   :  { %p3173_p6 = por %p3172_p5, %p3171_p4 }
  0x11   :  { %p3174_p7 = pnand %p3173_p6, %p3167_p3 }
  0x13   :  { %3177 = shalt.err (!%p3174_p7)
}
  0x14   :  { %38 = dma.hbm_to_vmem [thread:$0]  %s3824_s1, 128, %s36_s25, [#allocation6]  }
  0x15   :  { %s3178_s17 = scalar_lea.hbm %s3827_s4, 1024 }
  0x16   :  { %p3179_p8 = scmp.ne.s32.totalorder %s3827_s4, %s3178_s17  ;;  %p3182_p9 = scmp.lt.u32.totalorder %s3178_s17, %s3827_s4 }
  0x18   :  { %p3184_p10 = pnand %p3182_p9, %p3179_p8 }
  0x1a   :  { %3187 = shalt.err (!%p3184_p10)
}
  0x1b   :  { %s3188_s22 = scalar_lea.vmem %s3380_s27, 1024  ;;  %p3193_p12 = scmp.lt.s32.totalorder %s3380_s27, %s3380_s27 }
  0x1c   :  { %p3189_p11 = scmp.ne.s32.totalorder %s3380_s27, %s3188_s22  ;;  %p3194_p13 = scmp.lt.s32.totalorder %s3188_s22, %s3188_s22 }
  0x1e   :  { %p3195_p0 = por %p3194_p13, %p3193_p12 }
  0x20   :  { %p3196_p1 = pnand %p3195_p0, %p3189_p11 }
  0x22   :  { %3199 = shalt.err (!%p3196_p1)
}
  0x23   :  { %s3322_s1 = smov 64   ;;  %s3323_s23 = smov 4  }
  0x24   :  { %64 = dma.hbm_to_vmem [thread:$0]  %s3827_s4, 1024, %s3380_s27, [#allocation9], %s3322_s1, %s3322_s1, %s3323_s23  }
  0x25   :  { %s3324_s26 = smov [#allocation2]   ;;  %s3200_s8 = scalar_lea.hbm %s3823_s0, 512 }
  0x26   :  { %s22_s28 = sshll.u32 %s3324_s26, 4  ;;  %p3201_p2 = scmp.ne.s32.totalorder %s3823_s0, %s3200_s8  ;;  %s23_s28 = int_to_ptr.vmem [resolvable:$true] %s22_s28 }
  0x27   :  { %p3204_p3 = scmp.lt.u32.totalorder %s3200_s8, %s3823_s0 }
  0x29   :  { %p3206_p4 = pnand %p3204_p3, %p3201_p2 }
  0x2b   :  { %3209 = shalt.err (!%p3206_p4)
}
  0x2c   :  { %s3210_s13 = scalar_lea.vmem %s23_s28, 512  ;;  %p3215_p6 = scmp.lt.s32.totalorder %s23_s28, %s23_s28 }
  0x2d   :  { %p3211_p5 = scmp.ne.s32.totalorder %s23_s28, %s3210_s13  ;;  %p3216_p7 = scmp.lt.s32.totalorder %s3210_s13, %s3210_s13 }
  0x2f   :  { %p3217_p8 = por %p3216_p7, %p3215_p6 }
  0x31   :  { %p3218_p9 = pnand %p3217_p8, %p3211_p5 }
  0x33   :  { %3221 = shalt.err (!%p3218_p9)
}
  0x34   :  { %s3325_s4 = smov 128   ;;  %s3326_s27 = smov 8  }
  0x35   :  { %28 = dma.hbm_to_vmem [thread:$0]  %s3823_s0, 512, %s23_s28, [#allocation3], %s3325_s4, %s3325_s4, %s3326_s27  }
  0x36   :  { %s3327_s16 = smov [#allocation7]   ;;  %s3222_s20 = scalar_lea.hbm %s3826_s3, 3072 }
  0x37   :  { %s46_s17 = sshll.u32 %s3327_s16, 4  ;;  %p3223_p10 = scmp.ne.s32.totalorder %s3826_s3, %s3222_s20  ;;  %s47_s17 = int_to_ptr.vmem [resolvable:$true] %s46_s17 }
  0x38   :  { %p3226_p11 = scmp.lt.u32.totalorder %s3222_s20, %s3826_s3 }
  0x3a   :  { %p3228_p12 = pnand %p3226_p11, %p3223_p10 }
  0x3c   :  { %3231 = shalt.err (!%p3228_p12)
}
  0x3d   :  { %s3232_s26 = scalar_lea.vmem %s47_s17, 3072  ;;  %p3237_p0 = scmp.lt.s32.totalorder %s47_s17, %s47_s17 }
  0x3e   :  { %p3233_p13 = scmp.ne.s32.totalorder %s47_s17, %s3232_s26  ;;  %p3238_p1 = scmp.lt.s32.totalorder %s3232_s26, %s3232_s26 }
  0x40   :  { %p3239_p2 = por %p3238_p1, %p3237_p0 }
  0x42   :  { %p3240_p3 = pnand %p3239_p2, %p3233_p13 }
  0x44   :  { %3243 = shalt.err (!%p3240_p3)
}
  0x45   :  { %s3328_s0 = smov 192   ;;  %s3329_s28 = smov 12  }
  0x46   :  { %52 = dma.hbm_to_vmem [thread:$0]  %s3826_s3, 3072, %s47_s17, [#allocation6], %s3328_s0, %s3328_s0, %s3329_s28  }
  0x47   :  { %s3330_s8 = smov [#allocation10]   ;;  %s3244_s12 = scalar_lea.hbm %s3828_s5, 4096 }
  0x48   :  { %s70_s9 = sshll.u32 %s3330_s8, 4  ;;  %p3245_p4 = scmp.ne.s32.totalorder %s3828_s5, %s3244_s12  ;;  %s71_s9 = int_to_ptr.vmem [resolvable:$true] %s70_s9 }
  0x49   :  { %p3248_p5 = scmp.lt.u32.totalorder %s3244_s12, %s3828_s5 }
  0x4b   :  { %p3250_p6 = pnand %p3248_p5, %p3245_p4 }
  0x4d   :  { %3253 = shalt.err (!%p3250_p6)
}
  0x4e   :  { %s3254_s18 = scalar_lea.vmem %s71_s9, 4096  ;;  %p3259_p8 = scmp.lt.s32.totalorder %s71_s9, %s71_s9 }
  0x4f   :  { %p3255_p7 = scmp.ne.s32.totalorder %s71_s9, %s3254_s18  ;;  %p3260_p9 = scmp.lt.s32.totalorder %s3254_s18, %s3254_s18 }
  0x51   :  { %p3261_p10 = por %p3260_p9, %p3259_p8 }
  0x53   :  { %p3262_p11 = pnand %p3261_p10, %p3255_p7 }
  0x55   :  { %3265 = shalt.err (!%p3262_p11)
}
  0x56   :  { %s3331_s3 = smov 256   ;;  %s3332_s17 = smov 16  }
  0x57   :  { %76 = dma.hbm_to_vmem [thread:$0]  %s3828_s5, 4096, %s71_s9, [#allocation9], %s3331_s3, %s3331_s3, %s3332_s17  }
  0x58   :  { %s3333_s21 = smov [#allocation11]   ;;  %s3266_s26 = scalar_lea.hbm %s3829_s6, 4096 }
  0x59   :  { %s82_s22 = sshll.u32 %s3333_s21, 4  ;;  %p3267_p12 = scmp.ne.s32.totalorder %s3829_s6, %s3266_s26  ;;  %s83_s22 = int_to_ptr.vmem [resolvable:$true] %s82_s22 }
  0x5a   :  { %p3270_p13 = scmp.lt.u32.totalorder %s3266_s26, %s3829_s6 }
  0x5c   :  { %p3272_p0 = pnand %p3270_p13, %p3267_p12 }
  0x5e   :  { %3275 = shalt.err (!%p3272_p0)
}
  0x5f   :  { %s3276_s8 = scalar_lea.vmem %s83_s22, 4096  ;;  %p3281_p2 = scmp.lt.s32.totalorder %s83_s22, %s83_s22 }
  0x60   :  { %p3277_p1 = scmp.ne.s32.totalorder %s83_s22, %s3276_s8  ;;  %p3282_p3 = scmp.lt.s32.totalorder %s3276_s8, %s3276_s8 }
  0x62   :  { %p3283_p4 = por %p3282_p3, %p3281_p2 }
  0x64   :  { %p3284_p5 = pnand %p3283_p4, %p3277_p1 }
  0x66   :  { %3287 = shalt.err (!%p3284_p5)
}
  0x67   :  { %88 = dma.hbm_to_vmem [thread:$0]  %s3829_s6, 4096, %s83_s22, [#allocation12], %s3322_s1, %s3322_s1, %s3323_s23  }
  0x68   :  { %3310 = dma.done.wait [#allocation3], 512  }
  0x69   :  { %3311 = vsyncadd [#allocation3], 4294966784 }
  0x6a   :  { %3312 = dma.done.wait [#allocation6], 3200  }
  0x6b   :  { %3313 = vsyncadd [#allocation6], 4294964096 }
  0x6c   :  { %3314 = dma.done.wait [#allocation9], 5120  }
  0x6d   :  { %3315 = vsyncadd [#allocation9], 4294962176 }
  0x6e   :  { %3316 = dma.done.wait [#allocation12], 4096  }
  0x6f   :  { %3317 = vsyncadd [#allocation12], 4294963200  ;;  %v108_v0 = vld [vmem:[#allocation2] sm:$0xff]  ;;  %v110_v1 = vld [vmem:[#allocation2 + $0x10] sm:$0xff]  ;;  %v3334_v39 = vmov 0   ;;  %v158_v50 = vlaneseq  ;;  %vm3336_vm0 = vmmov 0  }
  0x70   :  { %v109_v2 = vld [vmem:[#allocation2 + $0x8] sm:$0xff]  ;;  %113 = vadd.xlane.f32.xlu0 %v108_v0  ;;  %117 = vadd.xlane.f32.xlu1 %v110_v1  ;;  %v111_v3 = vld [vmem:[#allocation2 + $0x18] sm:$0xff]  ;;  %v2954_v6 = vld [vmem:[#allocation7 + $0x1c] ss:$12 sps:$4 sm:$0xff]   ;;  %vm451_vm1 = vcmask 261120   ;;  %vm554_vm3 = vcmask 130048  }
  0x71   :  { %v2951_v4 = vld [vmem:[#allocation7 + $0x4] ss:$12 sps:$4 sm:$0xff]   ;;  %v2953_v5 = vld [vmem:[#allocation7] ss:$12 sps:$4 sm:$0xff]   ;;  %v2956_v7 = vld [vmem:[#allocation7 + $0x8] ss:$12 sps:$4 sm:$0xff]   ;;  %368 = vmatprep.mubr.bf16.mxu0 %v3334_v39 }
  0x72   :  { %336 = vmatprep.subr.bf16.mxu0 %v2951_v4  ;;  %2771 = vmatprep.subr.bf16.mxu1 %v2956_v7  ;;  %v2957_v24 = vld [vmem:[#allocation7 + $0x18] ss:$12 sps:$4 sm:$0xff]   ;;  %v2958_v25 = vld [vmem:[#allocation7 + $0x34] ss:$12 sps:$4 sm:$0xff]   ;;  %v2961_v27 = vld [vmem:[#allocation7 + $0x30] ss:$12 sps:$4 sm:$0xff]  }
  0x73   :  { %337 = vmatpush1.bf16.msra.mxu0 %v2953_v5  ;;  %2772 = vmatpush3.bf16.msra.mxu1 %v2956_v7  ;;  %v2960_v26 = vld [vmem:[#allocation7 + $0x20] ss:$12 sps:$4 sm:$0xff]   ;;  %v2964_v29 = vld [vmem:[#allocation7 + $0x38] ss:$12 sps:$4 sm:$0xff]   ;;  %v2965_v30 = vld [vmem:[#allocation7 + $0x48] ss:$12 sps:$4 sm:$0xff]  }
  0x74   :  { %115 = vadd.xlane.f32.xlu0 %v109_v2  ;;  %119 = vadd.xlane.f32.xlu1 %v111_v3  ;;  %v2962_v28 = vld [vmem:[#allocation7 + $0x4c] ss:$12 sps:$4 sm:$0xff]   ;;  %v2966_v31 = vld [vmem:[#allocation7 + $0x64] ss:$12 sps:$4 sm:$0xff]   ;;  %v2970_v34 = vld [vmem:[#allocation7 + $0x7c] ss:$12 sps:$4 sm:$0xff]  }
  0x75   :  { %338 = vmatprep.subr.bf16.mxu0 %v2954_v6  ;;  %2773 = vmatprep.subr.bf16.mxu1 %v2960_v26  ;;  %v2968_v32 = vld [vmem:[#allocation7 + $0x50] ss:$12 sps:$4 sm:$0xff]   ;;  %v2969_v33 = vld [vmem:[#allocation7 + $0x60] ss:$12 sps:$4 sm:$0xff]   ;;  %v2972_v35 = vld [vmem:[#allocation7 + $0x68] ss:$12 sps:$4 sm:$0xff]  }
  0x76   :  { %v2973_v36 = vld [vmem:[#allocation7 + $0x78] ss:$12 sps:$4 sm:$0xff]   ;;  %v2974_v37 = vld [vmem:[#allocation7 + $0x94] ss:$12 sps:$4 sm:$0xff]   ;;  %v2977_v40 = vld [vmem:[#allocation7 + $0x90] ss:$12 sps:$4 sm:$0xff]  }
  0x77   :  { %339 = vmatpush1.bf16.msra.mxu0 %v2957_v24  ;;  %2774 = vmatpush3.bf16.msra.mxu1 %v2960_v26  ;;  %v2976_v38 = vld [vmem:[#allocation7 + $0x80] ss:$12 sps:$4 sm:$0xff]   ;;  %v2980_v42 = vld [vmem:[#allocation7 + $0x98] ss:$12 sps:$4 sm:$0xff]   ;;  %v2981_v43 = vld [vmem:[#allocation7 + $0xa8] ss:$12 sps:$4 sm:$0xff]  }
  0x78   :  { %340 = vmatprep.subr.bf16.mxu0 %v2958_v25  ;;  %2775 = vmatprep.subr.bf16.mxu1 %v2964_v29  ;;  %v2978_v41 = vld [vmem:[#allocation7 + $0xac] ss:$12 sps:$4 sm:$0xff]   ;;  %v2982_v44 = vld [vmem:[#allocation7 + $0xb0] ss:$12 sps:$4 sm:$0xff]   ;;  %v3486_v56 = vshrl.u32 %v158_v50, 7  ;;  %s3337_s6 = smov 96  }
  0x79   :  { %v3489_v60 = vld [vmem:[#allocation5] sm:$0xff]  ;;  %s3338_s23 = smov 32  }
  0x7a   :  { %v160_v59 = vsub.s32 0, %v3486_v56 }
  0x7b   :  { %341 = vmatpush1.bf16.msra.mxu0 %v2961_v27  ;;  %2776 = vmatpush3.bf16.msra.mxu1 %v2964_v29 }
  0x7c   :  { %342 = vmatprep.subr.bf16.mxu0 %v2962_v28  ;;  %2777 = vmatprep.subr.bf16.mxu1 %v2968_v32  ;;  %v161_v63 = vrot.slane %v3489_v60, %v160_v59 }
  0x7f   :  { %343 = vmatpush1.bf16.msra.mxu0 %v2965_v30  ;;  %2778 = vmatpush3.bf16.msra.mxu1 %v2968_v32 }
  0x80   :  { %344 = vmatprep.subr.bf16.mxu0 %v2966_v31  ;;  %2779 = vmatprep.subr.bf16.mxu1 %v2972_v35 }
  0x83   :  { %345 = vmatpush1.bf16.msra.mxu0 %v2969_v33  ;;  %2780 = vmatpush3.bf16.msra.mxu1 %v2972_v35 }
  0x84   :  { %346 = vmatprep.subr.bf16.mxu0 %v2970_v34  ;;  %2781 = vmatprep.subr.bf16.mxu1 %v2976_v38 }
  0x87   :  { %347 = vmatpush1.bf16.msra.mxu0 %v2973_v36  ;;  %2782 = vmatpush3.bf16.msra.mxu1 %v2976_v38 }
  0x88   :  { %348 = vmatprep.subr.bf16.mxu0 %v2974_v37  ;;  %2783 = vmatprep.subr.bf16.mxu1 %v2980_v42 }
  0x8b   :  { %349 = vmatpush1.bf16.msra.mxu0 %v2977_v40  ;;  %2784 = vmatpush3.bf16.msra.mxu1 %v2980_v42 }
  0x8c   :  { %350 = vmatprep.subr.bf16.mxu0 %v2978_v41  ;;  %2785 = vmatprep.subr.bf16.mxu1 %v2982_v44 }
  0x8f   :  { %351 = vmatpush1.bf16.msra.mxu0 %v2981_v43  ;;  %2786 = vmatpush3.bf16.msra.mxu1 %v2982_v44  ;;  %v448_v44 = vand.u32 127, %v158_v50 }
  0x91   :  { %vm3542_vm2 = vcmp.ge.s32.totalorder %v3486_v56, %v448_v44 }
  0xfd   :  { %v114_v8 = vpop.xlane.xlu0 %113  ;;  %v118_v9 = vpop.xlane.xlu1 %117 }
  0xfe   :  { %v122_v10 = vmul.f32 0.0078125, %v114_v8  ;;  %v124_v11 = vmul.f32 0.0078125, %v118_v9 }
 0x100   :  { %v3468_v12 = vsub.f32 %v108_v0, %v122_v10  ;;  %v3470_v13 = vsub.f32 %v110_v1, %v124_v11  ;;  %v168_v0 = vsub.s32 1, %v3486_v56 }
 0x101   :  { %v116_v14 = vpop.xlane.xlu0 %115  ;;  %v120_v15 = vpop.xlane.xlu1 %119 }
 0x102   :  { %v123_v16 = vmul.f32 0.0078125, %v116_v14  ;;  %v130_v17 = vmul.f32 %v3468_v12, %v3468_v12  ;;  %v125_v18 = vmul.f32 0.0078125, %v120_v15  ;;  %v132_v21 = vmul.f32 %v3470_v13, %v3470_v13 }
 0x103   :  { %v169_v5 = vrot.slane %v3489_v60, %v168_v0 }
 0x104   :  { %v3474_v19 = vsub.f32 %v109_v2, %v123_v16  ;;  %134 = vadd.xlane.f32.xlu0 %v130_v17  ;;  %v3476_v20 = vsub.f32 %v111_v3, %v125_v18 }
 0x106   :  { %v131_v22 = vmul.f32 %v3474_v19, %v3474_v19  ;;  %v133_v23 = vmul.f32 %v3476_v20, %v3476_v20 }
 0x108   :  { %138 = vadd.xlane.f32.xlu0 %v132_v21  ;;  %136 = vadd.xlane.f32.xlu1 %v131_v22 }
 0x10c   :  { %140 = vadd.xlane.f32.xlu1 %v133_v23 }
 0x191   :  { %v135_v45 = vpop.xlane.xlu0 %134 }
 0x192   :  { %v142_v46 = vmul.f32 0.0078125, %v135_v45  ;;  %v446_v45 = vadd.s32 8, %v3486_v56 }
 0x194   :  { %v146_v47 = vadd.f32 1e-05, %v142_v46  ;;  %vm3548_vm4 = vcmp.ge.s32.totalorder %v446_v45, %v448_v44 }
 0x195   :  { %v137_v48 = vpop.xlane.xlu1 %136  ;;  %v139_v49 = vpop.xlane.xlu0 %138 }
 0x196   :  { %3071 = vrsqrt.f32 %v146_v47  ;;  %v143_v51 = vmul.f32 0.0078125, %v137_v48  ;;  %v144_v52 = vmul.f32 0.0078125, %v139_v49 }
 0x198   :  { %v147_v53 = vadd.f32 1e-05, %v143_v51  ;;  %v148_v54 = vadd.f32 1e-05, %v144_v52 }
 0x199   :  { %v141_v55 = vpop.xlane.xlu1 %140 }
 0x19a   :  { %3073 = vrsqrt.f32 %v147_v53  ;;  %v145_v57 = vmul.f32 0.0078125, %v141_v55 }
 0x19b   :  { %3075 = vrsqrt.f32 %v148_v54 }
 0x19c   :  { %v149_v58 = vadd.f32 1e-05, %v145_v57 }
 0x19e   :  { %3077 = vrsqrt.f32 %v149_v58 }
 0x1a0   :  { %v3072_v61 = vpop.eup %3071 }
 0x1a1   :  { %v154_v62 = vmul.f32 %v3072_v61, %v3468_v12 }
 0x1a3   :  { %v162_v4 = vmul.f32 %v161_v63, %v154_v62 }
 0x1a4   :  { %v3074_v1 = vpop.eup %3073 }
 0x1a5   :  { %v3076_v2 = vpop.eup %3075  ;;  %v155_v3 = vmul.f32 %v3074_v1, %v3474_v19  ;;  %v170_v9 = vadd.f32 %v169_v5, %v162_v4  ;;  %v3335_v19 = vmov 0.0  }
 0x1a6   :  { %v156_v6 = vmul.f32 %v3076_v2, %v3470_v13  ;;  %2791 = vmatprep.subr.bf16.mxu1 %v3335_v19  ;;  %2797 = vmatprep.subr.bf16.mxu0 %v3335_v19 }
 0x1a7   :  { %v163_v7 = vmul.f32 %v161_v63, %v155_v3 }
 0x1a8   :  { %v3078_v8 = vpop.eup %3077  ;;  %v164_v12 = vmul.f32 %v161_v63, %v156_v6 }
 0x1a9   :  { %v171_v10 = vadd.f32 %v169_v5, %v163_v7  ;;  %v157_v11 = vmul.f32 %v3078_v8, %v3476_v20 }
 0x1aa   :  { %v172_v16 = vadd.f32 %v169_v5, %v164_v12 }
 0x1ab   :  { %v174_v14 = vpack.c.bf16 %v171_v10, %v170_v9  ;;  %v165_v15 = vmul.f32 %v161_v63, %v157_v11 }
 0x1ad   :  { %369 = vmatmul.mubr.bf16.vlgmr.msra.gmra.mrb[0].mxu0 %v174_v14  ;;  %2787 = vmatprep.mubr.bf16.mxu1 %v174_v14  ;;  %v173_v17 = vadd.f32 %v169_v5, %v165_v15 }
 0x1ae   :  { %378 = vmatprep.mubr.bf16.mxu0 %v3334_v39 }
 0x1af   :  { %v175_v18 = vpack.c.bf16 %v173_v17, %v172_v16 }
 0x1b1   :  { %2788 = vmatmul.mubr.bf16.vlgmr.msra.gmra.mrb[0].mxu1 %v175_v18 }
 0x1b2   :  { %2793 = vmatprep.mubr.msk.bf16.mxu1 %vm3336_vm0, %v3335_v19 }
 0x1b5   :  { %379 = vmatmul.mubr.bf16.gmra.mrb[4].mxu0 %v175_v18 }
 0x1b6   :  { %2799 = vmatprep.mubr.msk.bf16.mxu0 %vm3336_vm0, %v3335_v19 }
 0x280   :  { %v370_v13 = vpop.f32.mrb[0].mxu0 }
 0x281   :  { %v372_v20 = vpop.f32.mrb[1].mxu0 }
 0x282   :  { %v374_v21 = vpop.f32.mrb[2].mxu0 }
 0x283   :  { %v3509_v22 = vpack.c.bf16 %v374_v21, %v370_v13  ;;  %v376_v23 = vpop.f32.mrb[3].mxu0 }
 0x284   :  { %v3511_v24 = vpack.c.bf16 %v376_v23, %v372_v20  ;;  %v2789_v25 = vpop.f32.mrb[0].mxu1 }
 0x285   :  { %v423_v26 = vpop.f32.mrb[1].mxu1 }
 0x286   :  { %v2790_v27 = vpop.f32.mrb[2].mxu1  ;;  %v456_v28 = vsel %vm451_vm1, %v3511_v24, 0 }
 0x287   :  { %v3515_v29 = vpack.c.bf16 %v2790_v27, %v2789_v25  ;;  %v426_v30 = vpop.f32.mrb[3].mxu1  ;;  %2792 = vmatpush3.bf16.xpose.msra.mxu1 %v456_v28 }
 0x288   :  { %v3517_v31 = vpack.c.bf16 %v426_v30, %v423_v26  ;;  %v380_v32 = vpop.f32.mrb[4].mxu0  ;;  %2803 = vmatprep.subr.bf16.mxu1 %v3335_v19 }
 0x289   :  { %v382_v33 = vpop.f32.mrb[5].mxu0 }
 0x28a   :  { %v384_v34 = vpop.f32.mrb[6].mxu0 }
 0x28b   :  { %v3520_v35 = vpack.c.bf16 %v384_v34, %v380_v32  ;;  %v386_v36 = vpop.f32.mrb[7].mxu0 }
 0x28c   :  { %v3522_v37 = vpack.c.bf16 %v386_v36, %v382_v33 }
 0x28e   :  { %2794 = vmatmul.mubr.msk.bf16.vlgmr.msra.gmra.mrb[4].mxu1 %vm451_vm1, %v3509_v22  ;;  %v503_v38 = vsel %vm451_vm1, %v3522_v37, 0 }
 0x28f   :  { %2798 = vmatpush3.bf16.xpose.msra.mxu0 %v503_v38  ;;  %2804 = vmatpush3.bf16.msra.mxu1 %v3517_v31 }
 0x290   :  { %2809 = vmatprep.subr.bf16.mxu0 %v3335_v19  ;;  %2805 = vmatprep.mubr.msk.bf16.mxu1 %vm3336_vm0, %v3335_v19 }
 0x291   :  { %2815 = vmatprep.subr.bf16.mxu1 %v3335_v19 }
 0x296   :  { %2800 = vmatmul.mubr.msk.bf16.vlgmr.msra.gmra.mrb[8].mxu0 %vm451_vm1, %v3520_v35 }
 0x297   :  { %2810 = vmatpush3.bf16.msra.mxu0 %v3515_v29  ;;  %2811 = vmatprep.mubr.msk.bf16.mxu0 %vm3336_vm0, %v3335_v19 }
 0x298   :  { %2821 = vmatprep.subr.bf16.mxu0 %v3335_v19 }
 0x361   :  { %v492_v40 = vpop.f32.mrb[4].mxu1 }
 0x362   :  { %v2795_v41 = vpop.f32.mrb[5].mxu1  ;;  %v550_v7 = vsel %vm3542_vm2, %v492_v40, -1e+30 }
 0x363   :  { %v495_v42 = vpop.f32.mrb[6].mxu1  ;;  %v555_v9 = vsel %vm554_vm3, %v550_v7, -inf }
 0x364   :  { %v2796_v43 = vpop.f32.mrb[7].mxu1  ;;  %v551_v6 = vsel %vm3548_vm4, %v495_v42, -1e+30 }
 0x365   :  { %v558_v8 = vsel %vm554_vm3, %v551_v6, -inf }
 0x369   :  { %v539_v47 = vpop.f32.mrb[8].mxu0 }
 0x36a   :  { %v552_v48 = vsel %vm3542_vm2, %v539_v47, -1e+30  ;;  %v2801_v49 = vpop.f32.mrb[9].mxu0 }
 0x36b   :  { %v542_v52 = vpop.f32.mrb[10].mxu0  ;;  %v561_v50 = vsel %vm554_vm3, %v552_v48, -inf }
 0x36c   :  { %v553_v53 = vsel %vm3548_vm4, %v542_v52, -1e+30  ;;  %562 = vmax.xlane.f32.xlu0 %v561_v50  ;;  %v2802_v54 = vpop.f32.mrb[11].mxu0 }
 0x36d   :  { %v564_v55 = vsel %vm554_vm3, %v553_v53, -inf }
 0x36e   :  { %565 = vmax.xlane.f32.xlu1 %v564_v55 }
 0x3f9   :  { %v563_v57 = vpop.xlane.xlu0 %562 }
 0x3fa   :  { %v569_v58 = vsub.f32 %v552_v48, %v563_v57 }
 0x3fb   :  { %v566_v61 = vpop.xlane.xlu1 %565 }
 0x3fc   :  { %v575_v62 = vmul.f32 1.442695, %v569_v58  ;;  %v570_v63 = vsub.f32 %v553_v53, %v566_v61 }
 0x3fe   :  { %3079 = vpow2.f32 %v575_v62  ;;  %v577_v1 = vmul.f32 1.442695, %v570_v63 }
 0x400   :  { %3081 = vpow2.f32 %v577_v1 }
 0x408   :  { %v3080_v2 = vpop.eup %3079 }
 0x409   :  { %v585_v3 = vsel %vm554_vm3, %v3080_v2, 0.0 }
 0x40a   :  { %v3082_v4 = vpop.eup %3081  ;;  %586 = vadd.xlane.f32.xlu0 %v585_v3 }
 0x40b   :  { %v588_v5 = vsel %vm554_vm3, %v3082_v4, 0.0 }
 0x40c   :  { %589 = vadd.xlane.f32.xlu1 %v588_v5 }
 0x41d   :  { %749 = vrot.lane.b32.xlu1 %v3520_v35, %s3337_s6 }
 0x420   :  { %752 = vrot.lane.b32.xlu0 %v3522_v37, %s3337_s6 }
 0x43f   :  { %559 = vmax.xlane.f32.xlu0 %v558_v8 }
 0x441   :  { %556 = vmax.xlane.f32.xlu1 %v555_v9 }
 0x497   :  { %v587_v10 = vpop.xlane.xlu0 %586 }
 0x498   :  { %3083 = vrcp.f32 %v587_v10 }
 0x499   :  { %v590_v11 = vpop.xlane.xlu1 %589 }
 0x49a   :  { %3085 = vrcp.f32 %v590_v11 }
 0x49b   :  { %v753_v17 = vpop.permute.xlu0 %752 }
 0x49c   :  { %v758_v13 = vsel %vm451_vm1, %v753_v17, 0 }
 0x49d   :  { %v750_v20 = vpop.permute.xlu1 %749 }
 0x4a2   :  { %v3084_v12 = vpop.eup %3083 }
 0x4a3   :  { %v596_v15 = vmul.f32 %v3084_v12, %v3080_v2 }
 0x4a4   :  { %v3086_v14 = vpop.eup %3085 }
 0x4a5   :  { %v598_v16 = vmul.f32 %v3086_v14, %v3082_v4 }
 0x4a7   :  { %v600_v18 = vpack.c.bf16 %v598_v16, %v596_v15 }
 0x4a9   :  { %2812 = vmatmul.mubr.msk.bf16.vlgmr.msra.gmra.mrb[12].mxu0 %vm554_vm3, %v600_v18 }
 0x4aa   :  { %2822 = vmatpush3.bf16.xpose.msra.mxu0 %v758_v13  ;;  %2823 = vmatprep.mubr.msk.bf16.mxu0 %vm3336_vm0, %v3335_v19 }
 0x4ab   :  { %2833 = vmatprep.subr.bf16.mxu0 %v3335_v19 }
 0x4b1   :  { %2824 = vmatmul.mubr.msk.bf16.vlgmr.msra.gmra.mrb[16].mxu0 %vm451_vm1, %v750_v20 }
 0x4b2   :  { %2835 = vmatprep.mubr.msk.bf16.mxu0 %vm3336_vm0, %v3335_v19 }
 0x4cc   :  { %v560_v21 = vpop.xlane.xlu0 %559 }
 0x4cd   :  { %v568_v23 = vsub.f32 %v551_v6, %v560_v21 }
 0x4ce   :  { %v557_v25 = vpop.xlane.xlu1 %556 }
 0x4cf   :  { %v573_v26 = vmul.f32 1.442695, %v568_v23  ;;  %v567_v27 = vsub.f32 %v550_v7, %v557_v25 }
 0x4d1   :  { %3087 = vpow2.f32 %v573_v26  ;;  %v571_v28 = vmul.f32 1.442695, %v567_v27 }
 0x4d3   :  { %3089 = vpow2.f32 %v571_v28 }
 0x4db   :  { %v3088_v30 = vpop.eup %3087 }
 0x4dc   :  { %v582_v32 = vsel %vm554_vm3, %v3088_v30, 0.0 }
 0x4dd   :  { %v3090_v33 = vpop.eup %3089  ;;  %583 = vadd.xlane.f32.xlu1 %v582_v32 }
 0x4de   :  { %v579_v34 = vsel %vm554_vm3, %v3090_v33, 0.0 }
 0x4df   :  { %580 = vadd.xlane.f32.xlu0 %v579_v34 }
 0x4ee   :  { %696 = vrot.lane.b32.xlu1 %v3509_v22, %s3337_s6 }
 0x4f5   :  { %699 = vrot.lane.b32.xlu0 %v3511_v24, %s3337_s6 }
 0x56a   :  { %v584_v36 = vpop.xlane.xlu1 %583 }
 0x56b   :  { %3091 = vrcp.f32 %v584_v36 }
 0x56c   :  { %v581_v38 = vpop.xlane.xlu0 %580 }
 0x56d   :  { %3093 = vrcp.f32 %v581_v38 }
 0x56e   :  { %v697_v54 = vpop.permute.xlu1 %696 }
 0x570   :  { %v700_v44 = vpop.permute.xlu0 %699 }
 0x571   :  { %v705_v47 = vsel %vm451_vm1, %v700_v44, 0 }
 0x575   :  { %v3092_v40 = vpop.eup %3091 }
 0x576   :  { %v594_v42 = vmul.f32 %v3092_v40, %v3088_v30 }
 0x577   :  { %v3094_v41 = vpop.eup %3093 }
 0x578   :  { %v592_v43 = vmul.f32 %v3094_v41, %v3090_v33 }
 0x57a   :  { %v599_v45 = vpack.c.bf16 %v594_v42, %v592_v43 }
 0x57c   :  { %2806 = vmatmul.mubr.msk.bf16.vlgmr.msra.gmra.mrb[8].mxu1 %vm554_vm3, %v599_v45  ;;  %v3584_v48 = vpop.f32.mrb[12].mxu0 }
 0x57d   :  { %2816 = vmatpush3.bf16.xpose.msra.mxu1 %v705_v47  ;;  %v2813_v49 = vpop.f32.mrb[13].mxu0  ;;  %2817 = vmatprep.mubr.msk.bf16.mxu1 %vm3336_vm0, %v3335_v19 }
 0x57e   :  { %v3588_v52 = vpop.f32.mrb[14].mxu0  ;;  %2827 = vmatprep.subr.bf16.mxu1 %v3335_v19 }
 0x57f   :  { %v690_v50 = vpack.c.bf16 %v3588_v52, %v3584_v48  ;;  %v2814_v53 = vpop.f32.mrb[15].mxu0 }
 0x584   :  { %2818 = vmatmul.mubr.msk.bf16.vlgmr.msra.gmra.mrb[12].mxu1 %vm451_vm1, %v697_v54  ;;  %v794_v55 = vpop.f32.mrb[16].mxu0 }
 0x585   :  { %v803_v57 = vsel %vm3542_vm2, %v794_v55, -1e+30  ;;  %v2825_v58 = vpop.f32.mrb[17].mxu0  ;;  %2829 = vmatprep.mubr.msk.bf16.mxu1 %vm3336_vm0, %v3335_v19 }
 0x586   :  { %v797_v61 = vpop.f32.mrb[18].mxu0  ;;  %v811_v62 = vsel %vm554_vm3, %v803_v57, -inf }
 0x587   :  { %v804_v63 = vsel %vm3548_vm4, %v797_v61, -1e+30  ;;  %812 = vmax.xlane.f32.xlu1 %v811_v62  ;;  %v2826_v1 = vpop.f32.mrb[19].mxu0 }
 0x588   :  { %v814_v2 = vsel %vm554_vm3, %v804_v63, -inf }
 0x589   :  { %815 = vmax.xlane.f32.xlu0 %v814_v2 }
 0x598   :  { %1089 = vrot.lane.b32.xlu1 %v3511_v24, %s3322_s1 }
 0x614   :  { %v813_v3 = vpop.xlane.xlu1 %812 }
 0x615   :  { %v819_v4 = vsub.f32 %v803_v57, %v813_v3 }
 0x616   :  { %v816_v5 = vpop.xlane.xlu0 %815 }
 0x617   :  { %v825_v6 = vmul.f32 1.442695, %v819_v4  ;;  %v820_v7 = vsub.f32 %v804_v63, %v816_v5 }
 0x618   :  { %v1090_v30 = vpop.permute.xlu1 %1089 }
 0x619   :  { %3095 = vpow2.f32 %v825_v6  ;;  %v827_v8 = vmul.f32 1.442695, %v820_v7  ;;  %v1095_v44 = vsel %vm451_vm1, %v1090_v30, 0 }
 0x61b   :  { %3097 = vpow2.f32 %v827_v8 }
 0x623   :  { %v3096_v9 = vpop.eup %3095 }
 0x624   :  { %v835_v10 = vsel %vm554_vm3, %v3096_v9, 0.0 }
 0x625   :  { %v3098_v11 = vpop.eup %3097  ;;  %836 = vadd.xlane.f32.xlu0 %v835_v10 }
 0x626   :  { %v838_v12 = vsel %vm554_vm3, %v3098_v11, 0.0 }
 0x627   :  { %839 = vadd.xlane.f32.xlu1 %v838_v12 }
 0x638   :  { %1087 = vrot.lane.b32.xlu1 %v3509_v22, %s3322_s1 }
 0x63b   :  { %900 = vrot.lane.b32.xlu0 %v3515_v29, %s3337_s6 }
 0x63c   :  { %1140 = vrot.lane.b32.xlu1 %v3522_v37, %s3322_s1 }
 0x63f   :  { %1138 = vrot.lane.b32.xlu0 %v3520_v35, %s3322_s1 }
 0x64f   :  { %v3614_v14 = vpop.f32.mrb[8].mxu1 }
 0x650   :  { %v2807_v15 = vpop.f32.mrb[9].mxu1 }
 0x651   :  { %v3616_v16 = vpop.f32.mrb[10].mxu1 }
 0x652   :  { %v689_v17 = vpack.c.bf16 %v3616_v16, %v3614_v14  ;;  %v2808_v18 = vpop.f32.mrb[11].mxu1 }
 0x657   :  { %v741_v13 = vpop.f32.mrb[12].mxu1 }
 0x658   :  { %v2819_v20 = vpop.f32.mrb[13].mxu1  ;;  %v801_v26 = vsel %vm3542_vm2, %v741_v13, -1e+30 }
 0x659   :  { %v744_v21 = vpop.f32.mrb[14].mxu1  ;;  %v805_v28 = vsel %vm554_vm3, %v801_v26, -inf }
 0x65a   :  { %v802_v23 = vsel %vm3548_vm4, %v744_v21, -1e+30  ;;  %v2820_v25 = vpop.f32.mrb[15].mxu1 }
 0x65b   :  { %v808_v27 = vsel %vm554_vm3, %v802_v23, -inf }
 0x65e   :  { %809 = vmax.xlane.f32.xlu0 %v808_v27 }
 0x660   :  { %806 = vmax.xlane.f32.xlu1 %v805_v28 }
 0x671   :  { %852 = vrot.lane.b32.xlu1 %v3517_v31, %s3337_s6 }
 0x6b2   :  { %v837_v32 = vpop.xlane.xlu0 %836 }
 0x6b3   :  { %3099 = vrcp.f32 %v837_v32 }
 0x6b4   :  { %v840_v33 = vpop.xlane.xlu1 %839 }
 0x6b5   :  { %3101 = vrcp.f32 %v840_v33 }
 0x6b6   :  { %v901_v34 = vpop.permute.xlu0 %900 }
 0x6b7   :  { %2834 = vmatpush3.bf16.msra.mxu0 %v901_v34 }
 0x6b8   :  { %2855 = vmatprep.subr.bf16.mxu0 %v3335_v19  ;;  %v1088_v43 = vpop.permute.xlu1 %1087 }
 0x6ba   :  { %v1139_v49 = vpop.permute.xlu0 %1138 }
 0x6bc   :  { %v1141_v45 = vpop.permute.xlu1 %1140 }
 0x6bd   :  { %v3100_v36 = vpop.eup %3099  ;;  %v1146_v47 = vsel %vm451_vm1, %v1141_v45, 0  ;;  %v2985_v45 = vld [vmem:[#allocation8] sm:$0xff]  }
 0x6be   :  { %v846_v40 = vmul.f32 %v3100_v36, %v3096_v9 }
 0x6bf   :  { %v3102_v38 = vpop.eup %3101 }
 0x6c0   :  { %v848_v41 = vmul.f32 %v3102_v38, %v3098_v11 }
 0x6c2   :  { %v850_v42 = vpack.c.bf16 %v848_v41, %v846_v40 }
 0x6c4   :  { %2836 = vmatmul.mubr.msk.bf16.vlgmr.msra.gmra.mrb[20].mxu0 %vm554_vm3, %v850_v42 }
 0x6c5   :  { %2856 = vmatpush3.bf16.xpose.msra.mxu0 %v1095_v44  ;;  %2857 = vmatprep.mubr.msk.bf16.mxu0 %vm3336_vm0, %v3335_v19  ;;  %v2984_v44 = vld [vmem:[#allocation8 + $0x18] sm:$0xff]  }
 0x6c6   :  { %2861 = vmatprep.subr.bf16.mxu0 %v3335_v19 }
 0x6cc   :  { %2858 = vmatmul.mubr.msk.bf16.vlgmr.msra.gmra.mrb[24].mxu0 %vm451_vm1, %v1088_v43  ;;  %v2983_v43 = vld [vmem:[#allocation8 + $0x10] sm:$0xff]  }
 0x6cd   :  { %2862 = vmatpush3.bf16.xpose.msra.mxu0 %v1146_v47  ;;  %2863 = vmatprep.mubr.msk.bf16.mxu0 %vm3336_vm0, %v3335_v19 }
 0x6ce   :  { %2873 = vmatprep.subr.bf16.mxu0 %v3335_v19 }
 0x6d4   :  { %2864 = vmatmul.mubr.msk.bf16.vlgmr.msra.gmra.mrb[28].mxu0 %vm451_vm1, %v1139_v49 }
 0x6d5   :  { %2875 = vmatprep.mubr.msk.bf16.mxu0 %vm3336_vm0, %v3335_v19 }
 0x6eb   :  { %v810_v53 = vpop.xlane.xlu0 %809 }
 0x6ec   :  { %v818_v54 = vsub.f32 %v802_v23, %v810_v53 }
 0x6ed   :  { %v807_v55 = vpop.xlane.xlu1 %806 }
 0x6ee   :  { %v817_v57 = vsub.f32 %v801_v26, %v807_v55  ;;  %v823_v58 = vmul.f32 1.442695, %v818_v54 }
 0x6f0   :  { %v821_v61 = vmul.f32 1.442695, %v817_v57 }
 0x6f1   :  { %v853_v62 = vpop.permute.xlu1 %852 }
 0x6f2   :  { %3103 = vpow2.f32 %v821_v61  ;;  %2828 = vmatpush3.bf16.msra.mxu1 %v853_v62 }
 0x6f3   :  { %3105 = vpow2.f32 %v823_v58  ;;  %2839 = vmatprep.subr.bf16.mxu1 %v2983_v43 }
 0x6fc   :  { %v3104_v63 = vpop.eup %3103 }
 0x6fd   :  { %v829_v1 = vsel %vm554_vm3, %v3104_v63, 0.0  ;;  %v3106_v2 = vpop.eup %3105 }
 0x6fe   :  { %830 = vadd.xlane.f32.xlu0 %v829_v1  ;;  %v832_v3 = vsel %vm554_vm3, %v3106_v2, 0.0 }
 0x702   :  { %833 = vadd.xlane.f32.xlu0 %v832_v3 }
 0x78b   :  { %v831_v4 = vpop.xlane.xlu0 %830 }
 0x78c   :  { %3107 = vrcp.f32 %v831_v4 }
 0x78f   :  { %v834_v5 = vpop.xlane.xlu0 %833 }
 0x790   :  { %3109 = vrcp.f32 %v834_v5 }
 0x796   :  { %v3108_v7 = vpop.eup %3107 }
 0x797   :  { %v3644_v6 = vpop.f32.mrb[20].mxu0  ;;  %v842_v15 = vmul.f32 %v3108_v7, %v3104_v63 }
 0x798   :  { %v2837_v8 = vpop.f32.mrb[21].mxu0 }
 0x799   :  { %v3646_v9 = vpop.f32.mrb[22].mxu0 }
 0x79a   :  { %v3110_v10 = vpop.eup %3109  ;;  %v948_v11 = vpack.c.bf16 %v3646_v9, %v3644_v6  ;;  %v2838_v12 = vpop.f32.mrb[23].mxu0 }
 0x79b   :  { %v844_v18 = vmul.f32 %v3110_v10, %v3106_v2 }
 0x79d   :  { %v849_v13 = vpack.c.bf16 %v844_v18, %v842_v15 }
 0x79f   :  { %2830 = vmatmul.mubr.msk.bf16.vlgmr.msra.gmra.mrb[16].mxu1 %vm554_vm3, %v849_v13  ;;  %v1131_v20 = vpop.f32.mrb[24].mxu0 }
 0x7a0   :  { %v1189_v21 = vsel %vm3542_vm2, %v1131_v20, -1e+30  ;;  %v2859_v23 = vpop.f32.mrb[25].mxu0  ;;  %2840 = vmatpush3.bf16.msra.mxu1 %v2983_v43 }
 0x7a1   :  { %v1134_v25 = vpop.f32.mrb[26].mxu0  ;;  %v1193_v26 = vsel %vm554_vm3, %v1189_v21, -inf  ;;  %2841 = vmatprep.subr.bf16.mxu1 %v2984_v44 }
 0x7a2   :  { %v1190_v27 = vsel %vm3548_vm4, %v1134_v25, -1e+30  ;;  %1194 = vmax.xlane.f32.xlu0 %v1193_v26  ;;  %v2860_v28 = vpop.f32.mrb[27].mxu0  ;;  %v2986_v25 = vld [vmem:[#allocation8 + $0x8] sm:$0xff]  }
 0x7a3   :  { %v1196_v30 = vsel %vm554_vm3, %v1190_v27, -inf }
 0x7a4   :  { %2842 = vmatpush3.bf16.msra.mxu1 %v2984_v44 }
 0x7a5   :  { %2847 = vmatprep.subr.bf16.mxu1 %v2985_v45 }
 0x7a6   :  { %1197 = vmax.xlane.f32.xlu0 %v1196_v30 }
 0x7a7   :  { %v1182_v32 = vpop.f32.mrb[28].mxu0 }
 0x7a8   :  { %v1191_v33 = vsel %vm3542_vm2, %v1182_v32, -1e+30  ;;  %v2865_v34 = vpop.f32.mrb[29].mxu0 }
 0x7a9   :  { %v1185_v36 = vpop.f32.mrb[30].mxu0  ;;  %v1199_v38 = vsel %vm554_vm3, %v1191_v33, -inf }
 0x7aa   :  { %v1192_v40 = vsel %vm3548_vm4, %v1185_v36, -1e+30  ;;  %1200 = vmax.xlane.f32.xlu0 %v1199_v38  ;;  %v2866_v41 = vpop.f32.mrb[31].mxu0  ;;  %v2988_v38 = vld [vmem:[#allocation8 + $0x28] sm:$0xff]  }
 0x7ab   :  { %v1202_v42 = vsel %vm554_vm3, %v1192_v40, -inf }
 0x7ae   :  { %1203 = vmax.xlane.f32.xlu0 %v1202_v42 }
 0x82f   :  { %v1195_v47 = vpop.xlane.xlu0 %1194 }
 0x830   :  { %v1205_v49 = vsub.f32 %v1189_v21, %v1195_v47 }
 0x832   :  { %v1209_v53 = vmul.f32 1.442695, %v1205_v49 }
 0x833   :  { %v1198_v54 = vpop.xlane.xlu0 %1197 }
 0x834   :  { %3111 = vpow2.f32 %v1209_v53  ;;  %v1206_v55 = vsub.f32 %v1190_v27, %v1198_v54 }
 0x836   :  { %v1211_v57 = vmul.f32 1.442695, %v1206_v55 }
 0x837   :  { %v1201_v58 = vpop.xlane.xlu0 %1200 }
 0x838   :  { %3113 = vpow2.f32 %v1211_v57  ;;  %v1207_v61 = vsub.f32 %v1191_v33, %v1201_v58 }
 0x83a   :  { %v1213_v62 = vmul.f32 1.442695, %v1207_v61 }
 0x83b   :  { %v1204_v63 = vpop.xlane.xlu0 %1203 }
 0x83c   :  { %3115 = vpow2.f32 %v1213_v62  ;;  %v1208_v1 = vsub.f32 %v1192_v40, %v1204_v63 }
 0x83e   :  { %v3112_v2 = vpop.eup %3111  ;;  %v1215_v3 = vmul.f32 1.442695, %v1208_v1 }
 0x83f   :  { %v1217_v4 = vsel %vm554_vm3, %v3112_v2, 0.0 }
 0x840   :  { %3117 = vpow2.f32 %v1215_v3  ;;  %1218 = vadd.xlane.f32.xlu1 %v1217_v4 }
 0x842   :  { %v3114_v5 = vpop.eup %3113 }
 0x843   :  { %v1220_v7 = vsel %vm554_vm3, %v3114_v5, 0.0 }
 0x844   :  { %1221 = vadd.xlane.f32.xlu0 %v1220_v7 }
 0x846   :  { %v3116_v8 = vpop.eup %3115 }
 0x847   :  { %v1223_v10 = vsel %vm554_vm3, %v3116_v8, 0.0 }
 0x848   :  { %1224 = vadd.xlane.f32.xlu0 %v1223_v10 }
 0x84a   :  { %v3118_v12 = vpop.eup %3117 }
 0x84b   :  { %v1226_v15 = vsel %vm554_vm3, %v3118_v12, 0.0 }
 0x84c   :  { %1227 = vadd.xlane.f32.xlu0 %v1226_v15 }
 0x851   :  { %1286 = vrot.lane.b32.xlu1 %v3515_v29, %s3322_s1 }
 0x862   :  { %1239 = vrot.lane.b32.xlu0 %v3517_v31, %s3322_s1 }
 0x866   :  { %1412 = vrot.lane.b32.xlu0 %v3511_v24, %s3338_s23 }
 0x86a   :  { %1463 = vrot.lane.b32.xlu0 %v3522_v37, %s3338_s23 }
 0x86e   :  { %1410 = vrot.lane.b32.xlu0 %v3509_v22, %s3338_s23 }
 0x872   :  { %v892_v18 = vpop.f32.mrb[16].mxu1  ;;  %1461 = vrot.lane.b32.xlu0 %v3520_v35, %s3338_s23 }
 0x873   :  { %v2831_v13 = vpop.f32.mrb[17].mxu1 }
 0x874   :  { %v895_v20 = vpop.f32.mrb[18].mxu1 }
 0x875   :  { %v947_v21 = vpack.c.bf16 %v895_v20, %v892_v18  ;;  %v2832_v23 = vpop.f32.mrb[19].mxu1 }
 0x877   :  { %2843 = vmatprep.mubr.msk.bf16.mxu1 %vm451_vm1, %v947_v21 }
 0x878   :  { %2844 = vmatmul.mubr.msk.bf16.vlgmr.msra.gmra.mrb[20].mxu1 %vm451_vm1, %v948_v11 }
 0x879   :  { %2851 = vmatprep.mubr.msk.bf16.mxu1 %vm451_vm1, %v689_v17  ;;  %2848 = vmatpush3.bf16.msra.mxu1 %v2985_v45  ;;  %v2987_v17 = vld [vmem:[#allocation8 + $0x20] sm:$0xff]  }
 0x87a   :  { %2849 = vmatprep.subr.bf16.mxu1 %v2986_v25 }
 0x87d   :  { %2850 = vmatpush3.bf16.msra.mxu1 %v2986_v25 }
 0x87e   :  { %2867 = vmatprep.subr.bf16.mxu1 %v3335_v19 }
 0x884   :  { %2852 = vmatmul.mubr.msk.bf16.vlgmr.msra.gmra.mrb[20].mxu1 %vm451_vm1, %v690_v50 }
 0x885   :  { %2869 = vmatprep.mubr.msk.bf16.mxu1 %vm3336_vm0, %v3335_v19 }
 0x8cd   :  { %v1219_v22 = vpop.xlane.xlu1 %1218 }
 0x8ce   :  { %3119 = vrcp.f32 %v1219_v22 }
 0x8d1   :  { %v1287_v24 = vpop.permute.xlu1 %1286  ;;  %v1222_v35 = vpop.xlane.xlu0 %1221 }
 0x8d2   :  { %3121 = vrcp.f32 %v1222_v35  ;;  %2874 = vmatpush3.bf16.msra.mxu0 %v1287_v24 }
 0x8d3   :  { %2887 = vmatprep.subr.bf16.mxu0 %v3335_v19 }
 0x8d5   :  { %v1225_v37 = vpop.xlane.xlu0 %1224 }
 0x8d6   :  { %3123 = vrcp.f32 %v1225_v37 }
 0x8d8   :  { %v3120_v16 = vpop.eup %3119 }
 0x8d9   :  { %v1228_v14 = vpop.xlane.xlu0 %1227  ;;  %v1230_v52 = vmul.f32 %v3120_v16, %v3112_v2 }
 0x8da   :  { %3125 = vrcp.f32 %v1228_v14 }
 0x8dc   :  { %v3122_v48 = vpop.eup %3121 }
 0x8dd   :  { %v1232_v50 = vmul.f32 %v3122_v48, %v3114_v5  ;;  %v1240_v6 = vpop.permute.xlu0 %1239 }
 0x8de   :  { %2868 = vmatpush3.bf16.msra.mxu1 %v1240_v6 }
 0x8df   :  { %v1237_v9 = vpack.c.bf16 %v1232_v50, %v1230_v52  ;;  %2879 = vmatprep.subr.bf16.mxu1 %v2987_v17 }
 0x8e0   :  { %v3124_v11 = vpop.eup %3123 }
 0x8e1   :  { %2870 = vmatmul.mubr.msk.bf16.vlgmr.msra.gmra.mrb[24].mxu1 %vm554_vm3, %v1237_v9  ;;  %v1413_v27 = vpop.permute.xlu0 %1412  ;;  %v1234_v28 = vmul.f32 %v3124_v11, %v3116_v8 }
 0x8e2   :  { %2880 = vmatpush3.bf16.msra.mxu1 %v2987_v17  ;;  %v1418_v33 = vsel %vm451_vm1, %v1413_v27, 0 }
 0x8e3   :  { %2881 = vmatprep.subr.bf16.mxu1 %v2988_v38 }
 0x8e4   :  { %v3126_v26 = vpop.eup %3125 }
 0x8e5   :  { %v1236_v30 = vmul.f32 %v3126_v26, %v3118_v12  ;;  %v1464_v34 = vpop.permute.xlu0 %1463 }
 0x8e6   :  { %2882 = vmatpush3.bf16.msra.mxu1 %v2988_v38  ;;  %v1469_v55 = vsel %vm451_vm1, %v1464_v34, 0 }
 0x8e7   :  { %v1238_v32 = vpack.c.bf16 %v1236_v30, %v1234_v28  ;;  %2893 = vmatprep.subr.bf16.mxu1 %v3335_v19 }
 0x8e9   :  { %2876 = vmatmul.mubr.msk.bf16.vlgmr.msra.gmra.mrb[32].mxu0 %vm554_vm3, %v1238_v32  ;;  %v1411_v36 = vpop.permute.xlu0 %1410 }
 0x8ea   :  { %2888 = vmatpush3.bf16.xpose.msra.mxu0 %v1418_v33  ;;  %2889 = vmatprep.mubr.msk.bf16.mxu0 %vm3336_vm0, %v3335_v19 }
 0x8eb   :  { %2899 = vmatprep.subr.bf16.mxu0 %v3335_v19 }
 0x8ed   :  { %v1462_v3 = vpop.permute.xlu0 %1461 }
 0x8f1   :  { %2890 = vmatmul.mubr.msk.bf16.vlgmr.msra.gmra.mrb[36].mxu0 %vm451_vm1, %v1411_v36 }
 0x8f2   :  { %2901 = vmatprep.mubr.msk.bf16.mxu0 %vm3336_vm0, %v3335_v19 }
 0x9b4   :  { %v1279_v40 = vpop.f32.mrb[24].mxu1 }
 0x9b5   :  { %v2871_v41 = vpop.f32.mrb[25].mxu1 }
 0x9b6   :  { %v1282_v42 = vpop.f32.mrb[26].mxu1 }
 0x9b7   :  { %v1333_v43 = vpack.c.bf16 %v1282_v42, %v1279_v40  ;;  %v2872_v44 = vpop.f32.mrb[27].mxu1 }
 0x9b9   :  { %2883 = vmatprep.mubr.msk.bf16.mxu1 %vm451_vm1, %v1333_v43 }
 0x9bc   :  { %v1326_v45 = vpop.f32.mrb[32].mxu0 }
 0x9bd   :  { %v2877_v47 = vpop.f32.mrb[33].mxu0 }
 0x9be   :  { %v1329_v49 = vpop.f32.mrb[34].mxu0  ;;  %v2990_v47 = vld [vmem:[#allocation8 + $0x38] sm:$0xff]  }
 0x9bf   :  { %v1334_v53 = vpack.c.bf16 %v1329_v49, %v1326_v45  ;;  %v2878_v54 = vpop.f32.mrb[35].mxu0  ;;  %v2989_v45 = vld [vmem:[#allocation8 + $0x30] sm:$0xff]  }
 0x9c1   :  { %2884 = vmatmul.mubr.msk.bf16.vlgmr.msra.gmra.mrb[20].mxu1 %vm451_vm1, %v1334_v53 }
 0x9c2   :  { %2894 = vmatpush3.bf16.xpose.msra.mxu1 %v1469_v55  ;;  %2895 = vmatprep.mubr.msk.bf16.mxu1 %vm3336_vm0, %v3335_v19 }
 0x9c3   :  { %2905 = vmatprep.subr.bf16.mxu1 %v3335_v19 }
 0x9c4   :  { %v1454_v57 = vpop.f32.mrb[36].mxu0 }
 0x9c5   :  { %v1512_v58 = vsel %vm3542_vm2, %v1454_v57, -1e+30  ;;  %v2891_v61 = vpop.f32.mrb[37].mxu0 }
 0x9c6   :  { %v1457_v62 = vpop.f32.mrb[38].mxu0  ;;  %v1516_v63 = vsel %vm554_vm3, %v1512_v58, -inf }
 0x9c7   :  { %v1513_v1 = vsel %vm3548_vm4, %v1457_v62, -1e+30  ;;  %1517 = vmax.xlane.f32.xlu0 %v1516_v63  ;;  %v2892_v2 = vpop.f32.mrb[39].mxu0 }
 0x9c8   :  { %v1519_v4 = vsel %vm554_vm3, %v1513_v1, -inf  ;;  %v1735_v2 = vsub.s32 2, %v3486_v56 }
 0x9c9   :  { %2896 = vmatmul.mubr.msk.bf16.vlgmr.msra.gmra.mrb[28].mxu1 %vm451_vm1, %v1462_v3  ;;  %1520 = vmax.xlane.f32.xlu1 %v1519_v4 }
 0x9ca   :  { %2907 = vmatprep.mubr.msk.bf16.mxu1 %vm3336_vm0, %v3335_v19  ;;  %v1736_v3 = vrot.slane %v3489_v60, %v1735_v2  ;;  %v3154_v60 = vld [vmem:[#allocation2 + $0x18] sm:$0xff] }
 0xa54   :  { %v1518_v5 = vpop.xlane.xlu0 %1517 }
 0xa55   :  { %v1528_v7 = vsub.f32 %v1512_v58, %v1518_v5 }
 0xa56   :  { %v1521_v15 = vpop.xlane.xlu1 %1520 }
 0xa57   :  { %v1532_v8 = vmul.f32 1.442695, %v1528_v7  ;;  %v1529_v18 = vsub.f32 %v1513_v1, %v1521_v15  ;;  %v3151_v15 = vld [vmem:[#allocation2] sm:$0xff] }
 0xa59   :  { %3127 = vpow2.f32 %v1532_v8  ;;  %v1534_v13 = vmul.f32 1.442695, %v1529_v18 }
 0xa5b   :  { %3129 = vpow2.f32 %v1534_v13 }
 0xa63   :  { %v3128_v10 = vpop.eup %3127 }
 0xa64   :  { %v1540_v12 = vsel %vm554_vm3, %v3128_v10, 0.0 }
 0xa65   :  { %1541 = vadd.xlane.f32.xlu1 %v1540_v12  ;;  %v3130_v37 = vpop.eup %3129 }
 0xa66   :  { %v1543_v14 = vsel %vm554_vm3, %v3130_v37, 0.0 }
 0xa9c   :  { %v1505_v20 = vpop.f32.mrb[28].mxu1 }
 0xa9d   :  { %v1514_v21 = vsel %vm3542_vm2, %v1505_v20, -1e+30  ;;  %v2897_v23 = vpop.f32.mrb[29].mxu1 }
 0xa9e   :  { %v1508_v25 = vpop.f32.mrb[30].mxu1  ;;  %v1522_v19 = vsel %vm554_vm3, %v1514_v21, -inf }
 0xa9f   :  { %v1515_v22 = vsel %vm3548_vm4, %v1508_v25, -1e+30  ;;  %v2898_v24 = vpop.f32.mrb[31].mxu1  ;;  %1523 = vmax.xlane.f32.xlu0 %v1522_v19  ;;  %v3153_v25 = vld [vmem:[#allocation2 + $0x10] sm:$0xff] }
 0xaa0   :  { %v1525_v35 = vsel %vm554_vm3, %v1515_v22, -inf  ;;  %v2991_v24 = vld [vmem:[#allocation10] ss:$16 sps:$4 sm:$0xff]  }
 0xaa3   :  { %1526 = vmax.xlane.f32.xlu0 %v1525_v35  ;;  %v2993_v35 = vld [vmem:[#allocation10 + $0x4] ss:$16 sps:$4 sm:$0xff]  }
 0xaa7   :  { %1544 = vadd.xlane.f32.xlu0 %v1543_v14  ;;  %v2996_v14 = vld [vmem:[#allocation10 + $0xc] ss:$16 sps:$4 sm:$0xff]  }
 0xaf2   :  { %v1542_v27 = vpop.xlane.xlu1 %1541 }
 0xb2c   :  { %v1524_v16 = vpop.xlane.xlu0 %1523 }
 0xb2d   :  { %v1530_v17 = vsub.f32 %v1514_v21, %v1524_v16  ;;  %v3152_v21 = vld [vmem:[#allocation2 + $0x8] sm:$0xff] }
 0xb2e   :  { %v2999_v16 = vld [vmem:[#allocation10 + $0x24] ss:$16 sps:$4 sm:$0xff]  }
 0xb2f   :  { %v1536_v46 = vmul.f32 1.442695, %v1530_v17  ;;  %v3002_v17 = vld [vmem:[#allocation10 + $0x2c] ss:$16 sps:$4 sm:$0xff]  }
 0xb30   :  { %v1527_v48 = vpop.xlane.xlu0 %1526 }
 0xb31   :  { %3131 = vpow2.f32 %v1536_v46  ;;  %v1531_v52 = vsub.f32 %v1515_v22, %v1527_v48  ;;  %v2997_v46 = vld [vmem:[#allocation10 + $0x20] ss:$16 sps:$4 sm:$0xff]   ;;  %v3000_v48 = vld [vmem:[#allocation10 + $0x28] ss:$16 sps:$4 sm:$0xff]  }
 0xb33   :  { %v1538_v50 = vmul.f32 1.442695, %v1531_v52 }
 0xb34   :  { %v1545_v26 = vpop.xlane.xlu0 %1544 }
 0xb35   :  { %3133 = vpow2.f32 %v1538_v50 }
 0xb36   :  { %3135 = vrcp.f32 %v1545_v26 }
 0xb37   :  { %3137 = vrcp.f32 %v1542_v27 }
 0xb3b   :  { %v3132_v6 = vpop.eup %3131 }
 0xb3c   :  { %v1546_v51 = vsel %vm554_vm3, %v3132_v6, 0.0 }
 0xb3d   :  { %1547 = vadd.xlane.f32.xlu1 %v1546_v51 }
 0xb3f   :  { %v3134_v9 = vpop.eup %3133 }
 0xb40   :  { %v1549_v11 = vsel %vm554_vm3, %v3134_v9, 0.0  ;;  %v3136_v28 = vpop.eup %3135 }
 0xb41   :  { %1550 = vadd.xlane.f32.xlu0 %v1549_v11  ;;  %v3138_v32 = vpop.eup %3137  ;;  %v1555_v33 = vmul.f32 %v3136_v28, %v3130_v37  ;;  %v2994_v37 = vld [vmem:[#allocation10 + $0x8] ss:$16 sps:$4 sm:$0xff]  }
 0xb42   :  { %v1553_v34 = vmul.f32 %v3138_v32, %v3128_v10 }
 0xb44   :  { %v1560_v40 = vpack.c.bf16 %v1555_v33, %v1553_v34 }
 0xb4e   :  { %1562 = vrot.lane.b32.xlu1 %v3517_v31, %s3338_s23 }
 0xb57   :  { %1609 = vrot.lane.b32.xlu0 %v3515_v29, %s3338_s23 }
 0xbca   :  { %v1548_v30 = vpop.xlane.xlu1 %1547 }
 0xbcb   :  { %3139 = vrcp.f32 %v1548_v30 }
 0xbce   :  { %v1551_v36 = vpop.xlane.xlu0 %1550  ;;  %v1563_v38 = vpop.permute.xlu1 %1562 }
 0xbcf   :  { %3141 = vrcp.f32 %v1551_v36  ;;  %2900 = vmatpush3.bf16.msra.mxu0 %v1563_v38 }
 0xbd0   :  { %2021 = vmatprep.subr.bf16.mxu0 %v2993_v35 }
 0xbd2   :  { %v1610_v41 = vpop.permute.xlu0 %1609  ;;  %2902 = vmatmul.mubr.msk.bf16.vlgmr.msra.gmra.mrb[40].mxu0 %vm554_vm3, %v1560_v40 }
 0xbd3   :  { %2906 = vmatpush3.bf16.msra.mxu1 %v1610_v41  ;;  %2053 = vmatprep.mubr.bf16.mxu0 %v3334_v39  ;;  %v3005_v41 = vld [vmem:[#allocation10 + $0x44] ss:$16 sps:$4 sm:$0xff]  }
 0xbd4   :  { %2911 = vmatprep.subr.bf16.mxu1 %v2989_v45  ;;  %2022 = vmatpush1.bf16.msra.mxu0 %v2991_v24 }
 0xbd5   :  { %v3140_v29 = vpop.eup %3139  ;;  %2023 = vmatprep.subr.bf16.mxu0 %v2999_v16 }
 0xbd6   :  { %v1557_v42 = vmul.f32 %v3140_v29, %v3132_v6  ;;  %v3008_v29 = vld [vmem:[#allocation10 + $0x4c] ss:$16 sps:$4 sm:$0xff]  }
 0xbd8   :  { %2024 = vmatpush1.bf16.msra.mxu0 %v2997_v46 }
 0xbd9   :  { %v3142_v31 = vpop.eup %3141  ;;  %2025 = vmatprep.subr.bf16.mxu0 %v3005_v41 }
 0xbda   :  { %v1559_v43 = vmul.f32 %v3142_v31, %v3134_v9  ;;  %v3003_v31 = vld [vmem:[#allocation10 + $0x40] ss:$16 sps:$4 sm:$0xff]  }
 0xbdc   :  { %v1561_v44 = vpack.c.bf16 %v1559_v43, %v1557_v42  ;;  %v3006_v42 = vld [vmem:[#allocation10 + $0x48] ss:$16 sps:$4 sm:$0xff]   ;;  %2026 = vmatpush1.bf16.msra.mxu0 %v3003_v31  ;;  %v3011_v43 = vld [vmem:[#allocation10 + $0x64] ss:$16 sps:$4 sm:$0xff]  }
 0xbdd   :  { %2027 = vmatprep.subr.bf16.mxu0 %v3011_v43 }
 0xbde   :  { %2908 = vmatmul.mubr.msk.bf16.vlgmr.msra.gmra.mrb[32].mxu1 %vm554_vm3, %v1561_v44  ;;  %v3014_v44 = vld [vmem:[#allocation10 + $0x6c] ss:$16 sps:$4 sm:$0xff]  }
 0xbdf   :  { %2912 = vmatpush3.bf16.msra.mxu1 %v2989_v45  ;;  %v3009_v45 = vld [vmem:[#allocation10 + $0x60] ss:$16 sps:$4 sm:$0xff]  }
 0xbe0   :  { %2913 = vmatprep.subr.bf16.mxu1 %v2990_v47  ;;  %2028 = vmatpush1.bf16.msra.mxu0 %v3009_v45  ;;  %v3041_v45 = vld [vmem:[#allocation11] sm:$0xff]  }
 0xbe3   :  { %2914 = vmatpush3.bf16.msra.mxu1 %v2990_v47  ;;  %v3012_v47 = vld [vmem:[#allocation10 + $0x68] ss:$16 sps:$4 sm:$0xff]  }
 0xbe4   :  { %2074 = vmatprep.subr.bf16.mxu1 %v2996_v14 }
 0xca5   :  { %v1602_v49 = vpop.f32.mrb[40].mxu0 }
 0xca6   :  { %v2903_v53 = vpop.f32.mrb[41].mxu0 }
 0xca7   :  { %v1605_v54 = vpop.f32.mrb[42].mxu0  ;;  %v3020_v53 = vld [vmem:[#allocation10 + $0x8c] ss:$16 sps:$4 sm:$0xff]  }
 0xca8   :  { %v1656_v55 = vpack.c.bf16 %v1605_v54, %v1602_v49  ;;  %v2904_v57 = vpop.f32.mrb[43].mxu0  ;;  %v3017_v49 = vld [vmem:[#allocation10 + $0x84] ss:$16 sps:$4 sm:$0xff]   ;;  %v3015_v54 = vld [vmem:[#allocation10 + $0x80] ss:$16 sps:$4 sm:$0xff]  }
 0xca9   :  { %2029 = vmatprep.subr.bf16.mxu0 %v3017_v49  ;;  %v3023_v57 = vld [vmem:[#allocation10 + $0xa4] ss:$16 sps:$4 sm:$0xff]   ;;  %v3044_v49 = vld [vmem:[#allocation11 + $0xc8] sm:$0xff]  }
 0xcaa   :  { %2915 = vmatprep.mubr.msk.bf16.mxu1 %vm451_vm1, %v1656_v55  ;;  %v3018_v55 = vld [vmem:[#allocation10 + $0x88] ss:$16 sps:$4 sm:$0xff]   ;;  %2030 = vmatpush1.bf16.msra.mxu0 %v3015_v54 }
 0xcab   :  { %2031 = vmatprep.subr.bf16.mxu0 %v3023_v57  ;;  %v3045_v54 = vld [vmem:[#allocation11 + $0x8] sm:$0xff]  }
 0xcb1   :  { %v1649_v58 = vpop.f32.mrb[32].mxu1 }
 0xcb2   :  { %v2909_v61 = vpop.f32.mrb[33].mxu1 }
 0xcb3   :  { %v1652_v62 = vpop.f32.mrb[34].mxu1  ;;  %v3021_v61 = vld [vmem:[#allocation10 + $0xa0] ss:$16 sps:$4 sm:$0xff]  }
 0xcb4   :  { %v1657_v63 = vpack.c.bf16 %v1652_v62, %v1649_v58  ;;  %v2910_v1 = vpop.f32.mrb[35].mxu1  ;;  %v3026_v58 = vld [vmem:[#allocation10 + $0xac] ss:$16 sps:$4 sm:$0xff]   ;;  %v3024_v62 = vld [vmem:[#allocation10 + $0xa8] ss:$16 sps:$4 sm:$0xff]   ;;  %2032 = vmatpush1.bf16.msra.mxu0 %v3021_v61  ;;  %v3049_v61 = vld [vmem:[#allocation11 + $0x10] sm:$0xff]  }
 0xcb5   :  { %v3032_v1 = vld [vmem:[#allocation10 + $0xcc] ss:$16 sps:$4 sm:$0xff]  }
 0xcb6   :  { %2916 = vmatmul.mubr.msk.bf16.vlgmr.msra.gmra.mrb[20].mxu1 %vm451_vm1, %v1657_v63  ;;  %v3029_v63 = vld [vmem:[#allocation10 + $0xc4] ss:$16 sps:$4 sm:$0xff]  }
 0xcb7   :  { %2106 = vmatprep.mubr.bf16.mxu1 %v3334_v39  ;;  %2075 = vmatpush1.bf16.msra.mxu1 %v2994_v37 }
 0xcb8   :  { %2076 = vmatprep.subr.bf16.mxu1 %v3002_v17  ;;  %2033 = vmatprep.subr.bf16.mxu0 %v3029_v63  ;;  %v3051_v63 = vld [vmem:[#allocation11 + $0x58] sm:$0xff]  }
 0xcbb   :  { %2077 = vmatpush1.bf16.msra.mxu1 %v3000_v48  ;;  %v1791_v48 = vsub.s32 3, %v3486_v56 }
 0xcbc   :  { %2078 = vmatprep.subr.bf16.mxu1 %v3008_v29 }
 0xcbf   :  { %2079 = vmatpush1.bf16.msra.mxu1 %v3006_v42 }
 0xcc0   :  { %2080 = vmatprep.subr.bf16.mxu1 %v3014_v44 }
 0xcc3   :  { %2081 = vmatpush1.bf16.msra.mxu1 %v3012_v47  ;;  %v3042_v47 = vld [vmem:[#allocation11 + $0x80] sm:$0xff]  }
 0xcc4   :  { %2082 = vmatprep.subr.bf16.mxu1 %v3020_v53 }
 0xcc7   :  { %2083 = vmatpush1.bf16.msra.mxu1 %v3018_v55  ;;  %v3048_v55 = vld [vmem:[#allocation11 + $0xd0] sm:$0xff]  }
 0xcc8   :  { %2084 = vmatprep.subr.bf16.mxu1 %v3026_v58 }
 0xccb   :  { %2085 = vmatpush1.bf16.msra.mxu1 %v3024_v62  ;;  %v3050_v62 = vld [vmem:[#allocation11 + $0x90] sm:$0xff]  }
 0xccc   :  { %2086 = vmatprep.subr.bf16.mxu1 %v3032_v1  ;;  %v3052_v1 = vld [vmem:[#allocation11 + $0xd8] sm:$0xff]  }
 0xd89   :  { %v2917_v4 = vpop.f32.mrb[20].mxu1 }
 0xd8a   :  { %v1714_v5 = vpop.f32.mrb[21].mxu1  ;;  %v1739_v12 = vadd.f32 %v2917_v4, %v1736_v3  ;;  %v3030_v4 = vld [vmem:[#allocation10 + $0xc8] ss:$16 sps:$4 sm:$0xff]  }
 0xd8b   :  { %v1737_v7 = vadd.f32 %v1736_v3, %v1714_v5  ;;  %v2918_v8 = vpop.f32.mrb[22].mxu1  ;;  %v3035_v5 = vld [vmem:[#allocation10 + $0xe4] ss:$16 sps:$4 sm:$0xff]   ;;  %2087 = vmatpush1.bf16.msra.mxu1 %v3030_v4 }
 0xd8c   :  { %v1717_v10 = vpop.f32.mrb[23].mxu1  ;;  %v1740_v20 = vadd.f32 %v2918_v8, %v1736_v3  ;;  %v3750_v19 = vadd.f32 %v3153_v25, %v1739_v12  ;;  %v3033_v8 = vld [vmem:[#allocation10 + $0xe0] ss:$16 sps:$4 sm:$0xff]  }
 0xd8d   :  { %v3745_v18 = vadd.f32 %v3151_v15, %v1737_v7  ;;  %v1738_v13 = vadd.f32 %v1736_v3, %v1717_v10  ;;  %v3027_v3 = vld [vmem:[#allocation10 + $0xc0] ss:$16 sps:$4 sm:$0xff]   ;;  %v3038_v7 = vld [vmem:[#allocation10 + $0xec] ss:$16 sps:$4 sm:$0xff]   ;;  %v3036_v10 = vld [vmem:[#allocation10 + $0xe8] ss:$16 sps:$4 sm:$0xff]  }
 0xd8e   :  { %v3753_v22 = vadd.f32 %v3154_v60, %v1740_v20  ;;  %2034 = vmatpush1.bf16.msra.mxu0 %v3027_v3  ;;  %2088 = vmatprep.subr.bf16.mxu1 %v3038_v7  ;;  %v3039_v12 = vld [vmem:[#allocation11 + $0x40] sm:$0xff]   ;;  %v3054_v3 = vld [vmem:[#allocation11 + $0x98] sm:$0xff]  }
 0xd8f   :  { %v3747_v23 = vadd.f32 %v3152_v21, %v1738_v13  ;;  %1745 = vadd.xlane.f32.xlu1 %v3745_v18  ;;  %2035 = vmatprep.subr.bf16.mxu0 %v3035_v5  ;;  %v3040_v15 = vld [vmem:[#allocation11 + $0xc0] sm:$0xff]  }
 0xd90   :  { %2089 = vmatpush1.bf16.msra.mxu1 %v3036_v10  ;;  %v3055_v4 = vld [vmem:[#allocation11 + $0x60] sm:$0xff]   ;;  %v3059_v10 = vld [vmem:[#allocation11 + $0x68] sm:$0xff]  }
 0xd91   :  { %1747 = vadd.xlane.f32.xlu0 %v3747_v23  ;;  %2743 = vmatprep.subr.bf16.mxu1 %v3040_v15  ;;  %v3056_v5 = vld [vmem:[#allocation11 + $0xe0] sm:$0xff]   ;;  %v3061_v15 = vld [vmem:[#allocation11 + $0x28] sm:$0xff]  }
 0xd92   :  { %2036 = vmatpush1.bf16.msra.mxu0 %v3033_v8  ;;  %v3057_v7 = vld [vmem:[#allocation11 + $0x20] sm:$0xff]  }
 0xd93   :  { %1749 = vadd.xlane.f32.xlu1 %v3750_v19  ;;  %2715 = vmatprep.subr.bf16.mxu0 %v3039_v12  ;;  %v3058_v8 = vld [vmem:[#allocation11 + $0xa0] sm:$0xff]   ;;  %v3060_v12 = vld [vmem:[#allocation11 + $0xe8] sm:$0xff]  }
 0xd95   :  { %1751 = vadd.xlane.f32.xlu0 %v3753_v22 }
 0xe1c   :  { %v1746_v52 = vpop.xlane.xlu1 %1745 }
 0xe1d   :  { %v1753_v50 = vmul.f32 0.0078125, %v1746_v52  ;;  %v3778_v52 = vld [vmem:[#allocation5] sm:$0xff] }
 0xe1e   :  { %v1748_v6 = vpop.xlane.xlu0 %1747 }
 0xe1f   :  { %v3758_v51 = vsub.f32 %v3745_v18, %v1753_v50  ;;  %v1754_v9 = vmul.f32 0.0078125, %v1748_v6  ;;  %v1792_v50 = vrot.slane %v3778_v52, %v1791_v48  ;;  %v1799_v6 = vsub.s32 4, %v3486_v56 }
 0xe20   :  { %v1750_v11 = vpop.xlane.xlu1 %1749 }
 0xe21   :  { %v3761_v26 = vsub.f32 %v3747_v23, %v1754_v9  ;;  %v1755_v27 = vmul.f32 0.0078125, %v1750_v11  ;;  %v1761_v28 = vmul.f32 %v3758_v51, %v3758_v51 }
 0xe22   :  { %v1752_v30 = vpop.xlane.xlu0 %1751 }
 0xe23   :  { %v3766_v32 = vsub.f32 %v3750_v19, %v1755_v27  ;;  %v1756_v33 = vmul.f32 0.0078125, %v1752_v30  ;;  %1765 = vadd.xlane.f32.xlu1 %v1761_v28  ;;  %v1762_v34 = vmul.f32 %v3761_v26, %v3761_v26 }
 0xe25   :  { %v3771_v36 = vsub.f32 %v3753_v22, %v1756_v33  ;;  %1767 = vadd.xlane.f32.xlu0 %v1762_v34  ;;  %v1763_v38 = vmul.f32 %v3766_v32, %v3766_v32  ;;  %v1800_v33 = vrot.slane %v3778_v52, %v1799_v6 }
 0xe27   :  { %1769 = vadd.xlane.f32.xlu1 %v1763_v38  ;;  %v1764_v40 = vmul.f32 %v3771_v36, %v3771_v36 }
 0xe29   :  { %1771 = vadd.xlane.f32.xlu0 %v1764_v40 }
 0xeb0   :  { %v1766_v13 = vpop.xlane.xlu1 %1765 }
 0xeb1   :  { %v1773_v20 = vmul.f32 0.0078125, %v1766_v13  ;;  %v3062_v13 = vld [vmem:[#allocation11 + $0xa8] sm:$0xff]  }
 0xeb2   :  { %v1768_v21 = vpop.xlane.xlu0 %1767 }
 0xeb3   :  { %v1777_v25 = vadd.f32 1e-05, %v1773_v20  ;;  %v1774_v60 = vmul.f32 0.0078125, %v1768_v21  ;;  %v3063_v20 = vld [vmem:[#allocation11 + $0x70] sm:$0xff]  }
 0xeb4   :  { %v1770_v24 = vpop.xlane.xlu1 %1769  ;;  %v3064_v21 = vld [vmem:[#allocation11 + $0xf0] sm:$0xff]  }
 0xeb5   :  { %3143 = vrsqrt.f32 %v1777_v25  ;;  %v1778_v35 = vadd.f32 1e-05, %v1774_v60  ;;  %v1775_v37 = vmul.f32 0.0078125, %v1770_v24  ;;  %v3065_v25 = vld [vmem:[#allocation11 + $0x30] sm:$0xff]   ;;  %v3067_v24 = vld [vmem:[#allocation11 + $0x78] sm:$0xff]  }
 0xeb6   :  { %v1772_v14 = vpop.xlane.xlu0 %1771  ;;  %v3066_v60 = vld [vmem:[#allocation11 + $0xb0] sm:$0xff]  }
 0xeb7   :  { %3145 = vrsqrt.f32 %v1778_v35  ;;  %v1779_v16 = vadd.f32 1e-05, %v1775_v37  ;;  %v1776_v17 = vmul.f32 0.0078125, %v1772_v14  ;;  %v3068_v35 = vld [vmem:[#allocation11 + $0xf8] sm:$0xff]  }
 0xeb8   :  { %v3069_v37 = vld [vmem:[#allocation11 + $0x38] sm:$0xff]  }
 0xeb9   :  { %3147 = vrsqrt.f32 %v1779_v16  ;;  %v1780_v46 = vadd.f32 1e-05, %v1776_v17  ;;  %v3070_v14 = vld [vmem:[#allocation11 + $0xb8] sm:$0xff]  }
 0xeba   :  { %v1839_v16 = vld [vmem:[%s3825_s2] sm:$0xf]  ;;  %s3339_s2 = smov [#allocation13]  }
 0xebb   :  { %3149 = vrsqrt.f32 %v1780_v46  ;;  %v1844_v17 = vrot.slane %v1839_v16, %v160_v59  ;;  %v1852_v46 = vrot.slane %v1839_v16, %v1735_v2  ;;  %v1856_v6 = vrot.slane %v1839_v16, %v1791_v48  ;;  %s2522_s11 = sshll.u32 %s3339_s2, 4  ;;  %s2523_s11 = int_to_ptr.vmem [resolvable:$true] %s2522_s11 }
 0xebc   :  { %s3288_s12 = scalar_lea.vmem %s2523_s11, 512  ;;  %p3293_p7 = scmp.lt.s32.totalorder %s2523_s11, %s2523_s11 }
 0xebd   :  { %p3289_p6 = scmp.ne.s32.totalorder %s2523_s11, %s3288_s12  ;;  %p3294_p8 = scmp.lt.s32.totalorder %s3288_s12, %s3288_s12 }
 0xebf   :  { %v3144_v9 = vpop.eup %3143  ;;  %p3295_p9 = por %p3294_p8, %p3293_p7 }
 0xec0   :  { %v1785_v11 = vmul.f32 %v3144_v9, %v3758_v51  ;;  %v3043_v51 = vld [vmem:[#allocation11 + $0x48] sm:$0xff]  }
 0xec1   :  { %v3146_v27 = vpop.eup %3145  ;;  %p3296_p10 = pnand %p3295_p9, %p3289_p6 }
 0xec2   :  { %v1786_v28 = vmul.f32 %v3146_v27, %v3761_v26  ;;  %v1793_v30 = vmul.f32 %v1792_v50, %v1785_v11 }
 0xec3   :  { %v3148_v34 = vpop.eup %3147 }
 0xec4   :  { %v1794_v38 = vmul.f32 %v1792_v50, %v1786_v28  ;;  %v1801_v41 = vadd.f32 %v1800_v33, %v1793_v30  ;;  %v1787_v31 = vmul.f32 %v3148_v34, %v3766_v32  ;;  %v3046_v32 = vld [vmem:[#allocation11 + $0x88] sm:$0xff]  }
 0xec5   :  { %v3150_v40 = vpop.eup %3149 }
 0xec6   :  { %v1802_v29 = vadd.f32 %v1800_v33, %v1794_v38  ;;  %v1788_v42 = vmul.f32 %v3150_v40, %v3771_v36  ;;  %v1795_v26 = vmul.f32 %v1792_v50, %v1787_v31  ;;  %v3047_v36 = vld [vmem:[#allocation11 + $0x50] sm:$0xff]  }
 0xec8   :  { %v1805_v43 = vpack.c.bf16 %v1802_v29, %v1801_v41  ;;  %v1796_v44 = vmul.f32 %v1792_v50, %v1788_v42  ;;  %v1803_v57 = vadd.f32 %v1800_v33, %v1795_v26  ;;  %v1848_v50 = vrot.slane %v1839_v16, %v168_v0 }
 0xeca   :  { %2054 = vmatmul.mubr.bf16.vlgmr.msra.gmra.mrb[44].mxu0 %v1805_v43  ;;  %2107 = vmatmul.mubr.bf16.vlgmr.msra.gmra.mrb[36].mxu1 %v1805_v43  ;;  %v1804_v53 = vadd.f32 %v1800_v33, %v1796_v44 }
 0xecb   :  { %2063 = vmatprep.mubr.bf16.mxu0 %v3334_v39  ;;  %2116 = vmatprep.mubr.bf16.mxu1 %v3334_v39  ;;  %v3053_v39 = vld [vmem:[#allocation11 + $0x18] sm:$0xff]  }
 0xecc   :  { %2716 = vmatpush3.bf16.msra.mxu0 %v3041_v45  ;;  %2744 = vmatpush3.bf16.msra.mxu1 %v3042_v47  ;;  %v1806_v58 = vpack.c.bf16 %v1804_v53, %v1803_v57 }
 0xecd   :  { %2717 = vmatprep.subr.bf16.mxu0 %v3043_v51  ;;  %2745 = vmatprep.subr.bf16.mxu1 %v3044_v49 }
 0xed0   :  { %2718 = vmatpush3.bf16.msra.mxu0 %v3045_v54  ;;  %2746 = vmatpush3.bf16.msra.mxu1 %v3046_v32 }
 0xed1   :  { %2719 = vmatprep.subr.bf16.mxu0 %v3047_v36  ;;  %2747 = vmatprep.subr.bf16.mxu1 %v3048_v55 }
 0xed2   :  { %2064 = vmatmul.mubr.bf16.gmra.mrb[48].mxu0 %v1806_v58  ;;  %2117 = vmatmul.mubr.bf16.gmra.mrb[40].mxu1 %v1806_v58 }
 0xed4   :  { %2720 = vmatpush3.bf16.msra.mxu0 %v3049_v61  ;;  %2748 = vmatpush3.bf16.msra.mxu1 %v3050_v62 }
 0xed5   :  { %2721 = vmatprep.subr.bf16.mxu0 %v3051_v63  ;;  %2749 = vmatprep.subr.bf16.mxu1 %v3052_v1 }
 0xed8   :  { %2722 = vmatpush3.bf16.msra.mxu0 %v3053_v39  ;;  %2750 = vmatpush3.bf16.msra.mxu1 %v3054_v3 }
 0xed9   :  { %2723 = vmatprep.subr.bf16.mxu0 %v3055_v4  ;;  %2751 = vmatprep.subr.bf16.mxu1 %v3056_v5 }
 0xedc   :  { %2724 = vmatpush3.bf16.msra.mxu0 %v3057_v7  ;;  %2752 = vmatpush3.bf16.msra.mxu1 %v3058_v8 }
 0xedd   :  { %2725 = vmatprep.subr.bf16.mxu0 %v3059_v10  ;;  %2753 = vmatprep.subr.bf16.mxu1 %v3060_v12 }
 0xee0   :  { %2726 = vmatpush3.bf16.msra.mxu0 %v3061_v15  ;;  %2754 = vmatpush3.bf16.msra.mxu1 %v3062_v13 }
 0xee1   :  { %2727 = vmatprep.subr.bf16.mxu0 %v3063_v20  ;;  %2755 = vmatprep.subr.bf16.mxu1 %v3064_v21 }
 0xee4   :  { %2728 = vmatpush3.bf16.msra.mxu0 %v3065_v25  ;;  %2756 = vmatpush3.bf16.msra.mxu1 %v3066_v60 }
 0xee5   :  { %2729 = vmatprep.subr.bf16.mxu0 %v3067_v24  ;;  %2757 = vmatprep.subr.bf16.mxu1 %v3068_v35 }
 0xee8   :  { %2730 = vmatpush3.bf16.msra.mxu0 %v3069_v37  ;;  %2758 = vmatpush3.bf16.msra.mxu1 %v3070_v14 }
 0xf9d   :  { %v2055_v9 = vpop.f32.mrb[44].mxu0  ;;  %v2108_v11 = vpop.f32.mrb[36].mxu1 }
 0xf9e   :  { %v2056_v27 = vadd.f32 %v2055_v9, %v1844_v17  ;;  %v2109_v28 = vadd.f32 %v2108_v11, %v1852_v46  ;;  %v2057_v30 = vpop.f32.mrb[45].mxu0  ;;  %v2110_v33 = vpop.f32.mrb[37].mxu1 }
 0xf9f   :  { %v2058_v34 = vadd.f32 %v2057_v30, %v1848_v50  ;;  %v2111_v38 = vadd.f32 %v2110_v33, %v1856_v6  ;;  %v2059_v40 = vpop.f32.mrb[46].mxu0  ;;  %v2112_v41 = vpop.f32.mrb[38].mxu1 }
 0xfa0   :  { %v2060_v59 = vadd.f32 %v2059_v40, %v1844_v17  ;;  %v2113_v29 = vadd.f32 %v2112_v41, %v1852_v46  ;;  %v2061_v31 = vpop.f32.mrb[47].mxu0  ;;  %v2114_v2 = vpop.f32.mrb[39].mxu1  ;;  %v2127_v0 = vmax.f32 %v2056_v27, 0.0  ;;  %v2129_v44 = vmax.f32 %v2109_v28, 0.0 }
 0xfa1   :  { %v2062_v42 = vadd.f32 %v2061_v31, %v1848_v50  ;;  %v2115_v43 = vadd.f32 %v2114_v2, %v1856_v6  ;;  %v2128_v47 = vmax.f32 %v2058_v34, 0.0  ;;  %v2130_v51 = vmax.f32 %v2111_v38, 0.0 }
 0xfa2   :  { %v2131_v45 = vmax.f32 %v2060_v59, 0.0  ;;  %v2133_v48 = vmax.f32 %v2113_v29, 0.0 }
 0xfa3   :  { %v2132_v49 = vmax.f32 %v2062_v42, 0.0  ;;  %v2134_v26 = vmax.f32 %v2115_v43, 0.0 }
 0xfa4   :  { %v2143_v53 = vpack.c.bf16 %v2131_v45, %v2127_v0  ;;  %v2145_v54 = vpack.c.bf16 %v2133_v48, %v2129_v44 }
 0xfa5   :  { %v2144_v32 = vpack.c.bf16 %v2132_v49, %v2128_v47  ;;  %v2146_v36 = vpack.c.bf16 %v2134_v26, %v2130_v51  ;;  %v2065_v55 = vpop.f32.mrb[48].mxu0  ;;  %v2118_v57 = vpop.f32.mrb[40].mxu1 }
 0xfa6   :  { %v2066_v58 = vadd.f32 %v2065_v55, %v1844_v17  ;;  %v2119_v61 = vadd.f32 %v2118_v57, %v1852_v46  ;;  %v2067_v62 = vpop.f32.mrb[49].mxu0  ;;  %v2120_v63 = vpop.f32.mrb[41].mxu1 }
 0xfa7   :  { %v2068_v1 = vadd.f32 %v2067_v62, %v1848_v50  ;;  %v2121_v39 = vadd.f32 %v2120_v63, %v1856_v6  ;;  %v2069_v3 = vpop.f32.mrb[50].mxu0  ;;  %v2122_v4 = vpop.f32.mrb[42].mxu1  ;;  %2443 = vmatprep.mubr.bf16.mxu0 %v2144_v32  ;;  %2492 = vmatprep.mubr.bf16.mxu1 %v2146_v36 }
 0xfa8   :  { %v2070_v5 = vadd.f32 %v2069_v3, %v1844_v17  ;;  %v2123_v7 = vadd.f32 %v2122_v4, %v1852_v46  ;;  %v2071_v8 = vpop.f32.mrb[51].mxu0  ;;  %v2124_v10 = vpop.f32.mrb[43].mxu1  ;;  %2444 = vmatmul.mubr.bf16.vlgmr.msra.gmra.mrb[52].mxu0 %v2143_v53  ;;  %2493 = vmatmul.mubr.bf16.vlgmr.msra.gmra.mrb[44].mxu1 %v2145_v54  ;;  %v2135_v13 = vmax.f32 %v2066_v58, 0.0  ;;  %v2137_v20 = vmax.f32 %v2119_v61, 0.0 }
 0xfa9   :  { %v2072_v12 = vadd.f32 %v2071_v8, %v1848_v50  ;;  %v2125_v15 = vadd.f32 %v2124_v10, %v1856_v6  ;;  %v2136_v60 = vmax.f32 %v2068_v1, 0.0  ;;  %v2138_v24 = vmax.f32 %v2121_v39, 0.0 }
 0xfaa   :  { %v2139_v21 = vmax.f32 %v2070_v5, 0.0  ;;  %v2141_v25 = vmax.f32 %v2123_v7, 0.0  ;;  %v2217_v17 = vsub.s32 5, %v3486_v56 }
 0xfab   :  { %v2140_v35 = vmax.f32 %v2072_v12, 0.0  ;;  %v2142_v37 = vmax.f32 %v2125_v15, 0.0 }
 0xfac   :  { %v2147_v14 = vpack.c.bf16 %v2139_v21, %v2135_v13  ;;  %v2149_v16 = vpack.c.bf16 %v2141_v25, %v2137_v20  ;;  %v2218_v6 = vrot.slane %v3778_v52, %v2217_v17 }
 0xfad   :  { %v2148_v9 = vpack.c.bf16 %v2140_v35, %v2136_v60  ;;  %v2150_v11 = vpack.c.bf16 %v2142_v37, %v2138_v24 }
 0xfaf   :  { %2451 = vmatprep.mubr.bf16.mxu0 %v2148_v9  ;;  %2500 = vmatprep.mubr.bf16.mxu1 %v2150_v11 }
 0xfb0   :  { %2452 = vmatmul.mubr.bf16.gmra.mrb[56].mxu0 %v2147_v14  ;;  %2501 = vmatmul.mubr.bf16.gmra.mrb[48].mxu1 %v2149_v16 }
0x107b   :  { %v2731_v46 = vpop.f32.mrb[52].mxu0  ;;  %v2759_v50 = vpop.f32.mrb[44].mxu1 }
0x107c   :  { %v2732_v27 = vpop.f32.mrb[53].mxu0  ;;  %v2760_v28 = vpop.f32.mrb[45].mxu1 }
0x107d   :  { %v2733_v30 = vadd.f32 %v2732_v27, %v2731_v46  ;;  %v2761_v33 = vadd.f32 %v2760_v28, %v2759_v50  ;;  %v2734_v34 = vpop.f32.mrb[54].mxu0  ;;  %v2762_v38 = vpop.f32.mrb[46].mxu1 }
0x107e   :  { %v2735_v40 = vpop.f32.mrb[55].mxu0  ;;  %v2763_v41 = vpop.f32.mrb[47].mxu1 }
0x107f   :  { %v2446_v59 = vadd.f32 %v2733_v30, %v2218_v6  ;;  %v2736_v29 = vadd.f32 %v2735_v40, %v2734_v34  ;;  %v2764_v31 = vadd.f32 %v2763_v41, %v2762_v38 }
0x1081   :  { %v2495_v2 = vadd.f32 %v2761_v33, %v2446_v59  ;;  %v2449_v42 = vadd.f32 %v2736_v29, %v2218_v6 }
0x1083   :  { %v2509_v43 = vadd.f32 %v2495_v2, %v3745_v18  ;;  %v2498_v56 = vadd.f32 %v2764_v31, %v2449_v42  ;;  %v2737_v0 = vpop.f32.mrb[56].mxu0  ;;  %v2765_v44 = vpop.f32.mrb[48].mxu1 }
0x1084   :  { %v2738_v45 = vpop.f32.mrb[57].mxu0  ;;  %v2766_v52 = vpop.f32.mrb[49].mxu1 }
0x1085   :  { %2513 = vst [vmem:[#allocation13] sm:$0xff] %v2509_v43  ;;  %v2510_v48 = vadd.f32 %v2498_v56, %v3747_v23  ;;  %v2739_v47 = vadd.f32 %v2738_v45, %v2737_v0  ;;  %v2767_v51 = vadd.f32 %v2766_v52, %v2765_v44  ;;  %v2740_v49 = vpop.f32.mrb[58].mxu0  ;;  %v2768_v26 = vpop.f32.mrb[50].mxu1 }
0x1086   :  { %v2741_v53 = vpop.f32.mrb[59].mxu0  ;;  %v2769_v54 = vpop.f32.mrb[51].mxu1 }
0x1087   :  { %2514 = vst [vmem:[#allocation13 + $0x8] sm:$0xff] %v2510_v48  ;;  %v2454_v32 = vadd.f32 %v2739_v47, %v2218_v6  ;;  %v2742_v36 = vadd.f32 %v2741_v53, %v2740_v49  ;;  %v2770_v55 = vadd.f32 %v2769_v54, %v2768_v26 }
0x1089   :  { %v2503_v57 = vadd.f32 %v2767_v51, %v2454_v32  ;;  %v2457_v18 = vadd.f32 %v2742_v36, %v2218_v6 }
0x108b   :  { %v2511_v58 = vadd.f32 %v2503_v57, %v3750_v19  ;;  %v2506_v61 = vadd.f32 %v2770_v55, %v2457_v18 }
0x108d   :  { %2515 = vst [vmem:[#allocation13 + $0x10] sm:$0xff] %v2511_v58  ;;  %v2512_v23 = vadd.f32 %v2506_v61, %v3753_v22 }
0x108f   :  { %2516 = vst [vmem:[#allocation13 + $0x18] sm:$0xff] %v2512_v23 }
0x1090   :  { %3299 = shalt.err (!%p3296_p10)
}
0x1091   :  { %s3300_s15 = scalar_lea.hbm %s3830_s7, 512 }
0x1092   :  { %p3301_p11 = scmp.ne.s32.totalorder %s3830_s7, %s3300_s15  ;;  %p3304_p12 = scmp.lt.u32.totalorder %s3300_s15, %s3830_s7 }
0x1094   :  { %p3306_p13 = pnand %p3304_p12, %p3301_p11 }
0x1096   :  { %3309 = shalt.err (!%p3306_p13)
}
0x1097   :  { %2528 = dma.vmem_to_hbm [thread:$0]  %s2523_s11, 512, %s3830_s7, [#allocation4], %s3325_s4, %s3325_s4, %s3326_s27  }
0x1098   :  { %3318 = dma.done.wait [#allocation4], 512  }
0x1099   :  { %3319 = vsyncadd [#allocation4], 4294966784 }
0x109a   :  { %2532 = vsyncpa [#allocation3], 1 }
0x109b   :  { %2533 = vsyncpa [#allocation6], 1 }
0x109c   :  { %2534 = vsyncpa [#allocation9], 1 }
0x109d   :  { %2535 = vsyncpa [#allocation12], 1 }
0x109e   :  { %2536 = vsyncpa [#allocation4], 1 }

</bundles_post_ra>
